<compile_context>
chip_gen: v7x
topology: tpu7x:2x2x1
jax: 0.10.0
libtpu: 0.0.40
codegen_flags: <defaults>
</compile_context>

<pallas_src>
import functools
import math

import jax
import jax.numpy as jnp
from jax.experimental import pallas as pl
from jax.experimental.pallas import tpu as pltpu


def _round_up(x, m):
    return (x + m - 1) // m * m


def _cdiv(a, b):
    return (a + b - 1) // b


# --------------------------------------------------------------------------- #
# Kernel
# --------------------------------------------------------------------------- #
def _rff_kernel(x_ref, w1_ref, b1_ref, w2_ref, b2_ref, o_ref, *,
                th, n_chunks, compute_dtype):
    """One row-tile of the fused RFF forward.

    x_ref : (tm, input_dim)   f32   (unpadded last dim)
    w1_ref: (input_dim, hid_p) bf16 (resident, constant index_map)
    b1_ref: (1, hid_p)        f32
    w2_ref: (hid_p, out_dim)  bf16 (RFF scale pre-folded)
    b2_ref: (1, out_dim)      f32
    o_ref : (tm, out_dim)     f32   (slim, full-dim last axis)
    """
    # Cast the x tile to bf16 once (MXU operand dtype).
    x = x_ref[...].astype(compute_dtype)

    if n_chunks == 1:
        # Whole hidden fits one chunk: no accumulator round-trip, no dynamic slices.
        h = jnp.dot(x, w1_ref[...], preferred_element_type=jnp.float32)
        h = jnp.cos(h + b1_ref[...])            # f32 bias + cos (v5e-safe)
        acc = jnp.dot(h.astype(compute_dtype), w2_ref[...],
                      preferred_element_type=jnp.float32)
    else:
        def chunk(c, acc):
            s = pl.multiple_of(c * th, th)      # lane/sublane-aligned offset hint
            h = jnp.dot(x, w1_ref[:, pl.ds(s, th)],
                        preferred_element_type=jnp.float32)   # (tm, th) f32
            h = jnp.cos(h + b1_ref[:, pl.ds(s, th)])
            return acc + jnp.dot(h.astype(compute_dtype),
                                 w2_ref[pl.ds(s, th), :],
                                 preferred_element_type=jnp.float32)

        acc0 = jnp.zeros((x_ref.shape[0], o_ref.shape[1]), jnp.float32)
        acc = jax.lax.fori_loop(0, n_chunks, chunk, acc0,
                                unroll=(n_chunks <= 4))

    o_ref[...] = (acc + b2_ref[...]).astype(o_ref.dtype)


# --------------------------------------------------------------------------- #
# Parameter preparation (done ONCE, outside the per-call forward)
# --------------------------------------------------------------------------- #
def prepare_rff_params(w1, b1, w2, b2, amplitude=1.0, *,
                       th_cap=2048, compute_dtype=jnp.bfloat16):
    """Pad / transpose / scale / cast the frozen RFF parameters once.

    Accepts PyTorch nn.Linear layout:
      w1: (hidden_dim, input_dim),  b1: (hidden_dim,)
      w2: (output_dim, hidden_dim), b2: (output_dim,)

    Zero padding of the hidden axis is exact: padded W1 columns / b1 entries give
    cos(0)=1, but the matching W2 rows are zero, so they contribute nothing.
    """
    hidden_dim, input_dim = w1.shape
    output_dim = w2.shape[0]
    cdt = jnp.dtype(compute_dtype)

    # Hidden chunking: pick th (multiple of 128, <= th_cap) and pad hidden to a
    # whole number of chunks so in-kernel dynamic slices never go out of bounds.
    th_cap = max(128, _round_up(th_cap, 128))
    hid128 = _round_up(hidden_dim, 128)
    n_chunks = max(1, _cdiv(hid128, th_cap))
    th = _round_up(_cdiv(hid128, n_chunks), 128)
    hid_p = th * n_chunks

    scale = math.sqrt(2.0 * amplitude ** 2 / hidden_dim)

    w1_p = jnp.zeros((input_dim, hid_p), cdt).at[:, :hidden_dim].set(
        w1.T.astype(cdt))
    b1_p = jnp.zeros((1, hid_p), jnp.float32).at[0, :hidden_dim].set(
        b1.astype(jnp.float32))
    # Fold the RFF scale into W2 (removes a (tm, th) VPU multiply per tile).
    w2_p = jnp.zeros((hid_p, output_dim), cdt).at[:hidden_dim, :].set(
        (scale * w2.T.astype(jnp.float32)).astype(cdt))
    b2_p = jnp.reshape(b2.astype(jnp.float32), (1, output_dim))

    meta = dict(input_dim=input_dim, hidden_dim=hidden_dim,
                output_dim=output_dim, hid_p=hid_p, th=th, n_chunks=n_chunks,
                compute_dtype=cdt)
    return (w1_p, b1_p, w2_p, b2_p), meta


# --------------------------------------------------------------------------- #
# Forward
# --------------------------------------------------------------------------- #
def rff_forward_prepared(x, params, meta, *, tm_max=1024):
    """Fused RFF forward using pre-prepared (padded / scaled / cast) parameters."""
    w1_p, b1_p, w2_p, b2_p = params
    N, input_dim = x.shape
    assert input_dim == meta["input_dim"], "input_dim mismatch with prepared params"
    hid_p, th, n_chunks = meta["hid_p"], meta["th"], meta["n_chunks"]
    output_dim = meta["output_dim"]
    cdt = meta["compute_dtype"]
    itemsize = jnp.dtype(cdt).itemsize

    # ---- Row tiling: big tiles to amortize grid-step overhead, but keep an even
    # number (>=2) of grid steps so v7x's two TensorCores stay balanced.
    n8 = _round_up(max(N, 1), 8)
    tm_max = max(8, _round_up(tm_max, 8))
    g = max(1, _cdiv(n8, tm_max))
    if g == 1 and n8 >= 16:
        g = 2
    elif g > 1 and g % 2 == 1:
        g += 1
    tm = _round_up(_cdiv(n8, g), 8)
    n_p = tm * g

    # Only the batch rows are padded (cheap); features stay unpadded for x/out.
    x_p = x if n_p == N else jnp.zeros((n_p, input_dim), x.dtype).at[:N].set(x)

    # ---- Cost estimate (tiny K/N matmuls -> the cos EUP work matters too).
    flops = 2 * n_p * hid_p * (input_dim + output_dim)
    bytes_accessed = (n_p * input_dim * 4
                      + w1_p.size * itemsize + w2_p.size * itemsize
                      + b1_p.size * 4 + b2_p.size * 4
                      + n_p * output_dim * 4)
    cost = pl.CostEstimate(flops=int(flops), transcendentals=int(n_p * hid_p),
                           bytes_accessed=int(bytes_accessed))

    # ---- VMEM budget: resident (double-buffered) operands + in-kernel
    # temporaries (h f32, cos f32, bias broadcast f32, bf16 copy of h).
    lane = 128
    vmem_need = (
        2 * tm * max(input_dim, lane) * 4                 # x tile (dbl-buffered)
        + 2 * tm * max(output_dim, lane) * 4              # out tile (dbl-buffered)
        + 2 * (max(input_dim, 8) * hid_p                  # W1 (resident)
               + hid_p * max(output_dim, lane)) * itemsize  # W2 (resident)
        + 2 * (8 * hid_p + 8 * lane) * 4                  # biases (sublane-padded)
        + tm * th * (4 + 4 + 4 + itemsize)                # h / cos / bcast / bf16
        + tm * max(output_dim, lane) * 4                  # f32 accumulator
        + tm * max(input_dim, lane) * itemsize            # bf16 x copy
    )
    vmem_cap = 48 * 1024 * 1024                           # safe on v7x (64 MiB)
    try:
        if pltpu.get_tpu_info().vmem_capacity_bytes >= 128 * 1024 * 1024:
            vmem_cap = 100 * 1024 * 1024                  # v5e / v6e headroom
    except Exception:
        pass
    vmem_limit = int(min(max(int(1.25 * vmem_need), 8 * 1024 * 1024), vmem_cap))

    kernel = functools.partial(_rff_kernel, th=th, n_chunks=n_chunks,
                               compute_dtype=cdt)

    out_padded = pl.pallas_call(
        kernel,
        out_shape=jax.ShapeDtypeStruct((n_p, output_dim), jnp.float32),
        grid=(g,),
        in_specs=[
            # x rows: unpadded last dim (== full array dim, legal), streamed per tile.
            pl.BlockSpec((tm, input_dim), lambda i: (i, 0)),
            # Resident parameters: constant block index -> DMA'd once per call.
            pl.BlockSpec((input_dim, hid_p), lambda i: (0, 0)),   # W1^T (padded H)
            pl.BlockSpec((1, hid_p), lambda i: (0, 0)),           # b1
            pl.BlockSpec((hid_p, output_dim), lambda i: (0, 0)),  # scaled W2^T
            pl.BlockSpec((1, output_dim), lambda i: (0, 0)),      # b2
        ],
        # Slim output block (full-dim last axis): writeback only real columns.
        out_specs=pl.BlockSpec((tm, output_dim), lambda i: (i, 0)),
        compiler_params=pltpu.CompilerParams(
            dimension_semantics=("parallel",),
            vmem_limit_bytes=vmem_limit,
        ),
        cost_estimate=cost,
    )(x_p, w1_p, b1_p, w2_p, b2_p)

    return out_padded[:N] if n_p != N else out_padded


def rff_forward(x, w1, b1, w2, b2, amplitude=1.0, *, tm_max=1024, th_cap=2048,
                compute_dtype=jnp.bfloat16):
    """Convenience one-shot wrapper (prepares params per call; prefer preparing once)."""
    params, meta = prepare_rff_params(w1, b1, w2, b2, amplitude,
                                      th_cap=th_cap, compute_dtype=compute_dtype)
    return rff_forward_prepared(x, params, meta, tm_max=tm_max)


# --------------------------------------------------------------------------- #
# Pure-JAX reference (same PyTorch weight layout)
# --------------------------------------------------------------------------- #
def rff_reference(x, w1, b1, w2, b2, amplitude=1.0, compute_dtype=jnp.float32):
    """Reference; compute_dtype mirrors the kernel's matmul-operand cast."""
    hidden_dim = w1.shape[0]
    scale = math.sqrt(2.0 * amplitude ** 2 / hidden_dim)
    cdt = jnp.dtype(compute_dtype)
    h = jnp.dot(x.astype(cdt), w1.T.astype(cdt),
                preferred_element_type=jnp.float32) + b1.astype(jnp.float32)
    h = jnp.cos(h)
    w2s = (scale * w2.T.astype(jnp.float32)).astype(cdt)
    y = jnp.dot(h.astype(cdt), w2s, preferred_element_type=jnp.float32)
    return y + b2.astype(jnp.float32)


# --------------------------------------------------------------------------- #
if __name__ == "__main__":
    # Small shapes consistent with forward(x: (N, input_dim)) -> (N, output_dim).
    N, input_dim, hidden_dim, output_dim = 256, 16, 64, 4
    amplitude = 1.0

    key = jax.random.PRNGKey(0)
    kx, kw1, kb1, kw2, kb2 = jax.random.split(key, 5)

    x = jax.random.normal(kx, (N, input_dim), dtype=jnp.float32)

    # Spectral-density sample (standard normal ~ RBF kernel), PyTorch layout.
    w1 = jax.random.normal(kw1, (hidden_dim, input_dim), dtype=jnp.float32)
    # Hidden bias ~ Uniform(0, 2*pi); frozen in PyTorch (irrelevant for forward).
    b1 = jax.random.uniform(kb1, (hidden_dim,), dtype=jnp.float32,
                            minval=0.0, maxval=2.0 * math.pi)
    # Output weights ~ Normal(0, 1), PyTorch layout.
    w2 = jax.random.normal(kw2, (output_dim, hidden_dim), dtype=jnp.float32)
    # Output bias: PyTorch nn.Linear default init.
    bound = 1.0 / math.sqrt(hidden_dim)
    b2 = jax.random.uniform(kb2, (output_dim,), dtype=jnp.float32,
                            minval=-bound, maxval=bound)

    # Prepare the frozen parameters ONCE, then run the forward.
    params, meta = prepare_rff_params(w1, b1, w2, b2, amplitude)
    out = rff_forward_prepared(x, params, meta, tm_max=1024)
    out = jax.block_until_ready(out)
    assert out.shape == (N, output_dim)

    # Tight check vs a reference that mirrors the kernel's bf16 matmul operands.
    ref_bf16 = rff_reference(x, w1, b1, w2, b2, amplitude,
                             compute_dtype=jnp.bfloat16)
    assert jnp.allclose(out, ref_bf16, atol=2e-2, rtol=2e-2), \
        "mismatch vs bf16-operand JAX reference"

    # Looser sanity check vs pure-f32 math (bf16 operand rounding is the only delta).
    ref_f32 = rff_reference(x, w1, b1, w2, b2, amplitude,
                            compute_dtype=jnp.float32)
    assert jnp.allclose(out, ref_f32, atol=1e-1, rtol=1e-1), \
        "mismatch vs f32 JAX reference"

    print("KERNEL_OK")
</pallas_src>

<mosaic_0001>
module attributes {stable_mosaic.version = 11 : i64} {
  func.func @_rff_kernel(%arg0: i32, %arg1: memref<128x16xf32, #tpu.memory_space<vmem>>, %arg2: memref<16x128xbf16, #tpu.memory_space<vmem>>, %arg3: memref<1x128xf32, #tpu.memory_space<vmem>>, %arg4: memref<128x4xbf16, #tpu.memory_space<vmem>>, %arg5: memref<1x4xf32, #tpu.memory_space<vmem>>, %arg6: memref<128x4xf32, #tpu.memory_space<vmem>>) attributes {dimension_semantics = [#tpu.dimension_semantics<parallel>], iteration_bounds = array<i64: 2>, scalar_prefetch = 0 : i64, scratch_operands = 0 : i64, tpu.core_type = #tpu.core_type<tc>, window_params = [{transform_indices = @transform_0, window_bounds = array<i64: 128, 16>}, {pipeline_mode = #tpu.pipeline_mode<synchronous>, transform_indices = @transform_1, window_bounds = array<i64: 16, 128>}, {pipeline_mode = #tpu.pipeline_mode<synchronous>, transform_indices = @transform_2, window_bounds = array<i64: 1, 128>}, {pipeline_mode = #tpu.pipeline_mode<synchronous>, transform_indices = @transform_3, window_bounds = array<i64: 128, 4>}, {pipeline_mode = #tpu.pipeline_mode<synchronous>, transform_indices = @transform_4, window_bounds = array<i64: 1, 4>}, {transform_indices = @transform_5, window_bounds = array<i64: 128, 4>}]} {
    %c0 = arith.constant 0 : index
    %c0_0 = arith.constant 0 : index
    %0 = vector.load %arg1[%c0, %c0_0] : memref<128x16xf32, #tpu.memory_space<vmem>>, vector<128x16xf32>
    %1 = arith.truncf %0 : vector<128x16xf32> to vector<128x16xbf16>
    %c0_1 = arith.constant 0 : index
    %c0_2 = arith.constant 0 : index
    %2 = vector.load %arg2[%c0_1, %c0_2] : memref<16x128xbf16, #tpu.memory_space<vmem>>, vector<16x128xbf16>
    %cst = arith.constant dense<0.000000e+00> : vector<128x128xf32>
    %3 = tpu.matmul %1, %2, %cst {dimension_numbers = #tpu.dot_dimension_numbers<[1], [0], [0], [1], [0, 0, 1, 1], [], []>} : vector<128x16xbf16>, vector<16x128xbf16>, vector<128x128xf32> -> vector<128x128xf32>
    %c0_3 = arith.constant 0 : index
    %c0_4 = arith.constant 0 : index
    %4 = vector.load %arg3[%c0_3, %c0_4] : memref<1x128xf32, #tpu.memory_space<vmem>>, vector<1x128xf32>
    %5 = vector.broadcast %4 : vector<1x128xf32> to vector<128x128xf32>
    %6 = arith.addf %3, %5 : vector<128x128xf32>
    %7 = math.cos %6 : vector<128x128xf32>
    %8 = arith.truncf %7 : vector<128x128xf32> to vector<128x128xbf16>
    %c0_5 = arith.constant 0 : index
    %c0_6 = arith.constant 0 : index
    %9 = vector.load %arg4[%c0_5, %c0_6] : memref<128x4xbf16, #tpu.memory_space<vmem>>, vector<128x4xbf16>
    %cst_7 = arith.constant dense<0.000000e+00> : vector<128x4xf32>
    %10 = tpu.matmul %8, %9, %cst_7 {dimension_numbers = #tpu.dot_dimension_numbers<[1], [0], [0], [1], [0, 0, 1, 1], [], []>} : vector<128x128xbf16>, vector<128x4xbf16>, vector<128x4xf32> -> vector<128x4xf32>
    %c0_8 = arith.constant 0 : index
    %c0_9 = arith.constant 0 : index
    %11 = vector.load %arg5[%c0_8, %c0_9] : memref<1x4xf32, #tpu.memory_space<vmem>>, vector<1x4xf32>
    %12 = vector.broadcast %11 : vector<1x4xf32> to vector<128x4xf32>
    %13 = arith.addf %10, %12 : vector<128x4xf32>
    %c0_10 = arith.constant 0 : index
    %c0_11 = arith.constant 0 : index
    %14 = vector.load %arg6[%c0_10, %c0_11] : memref<128x4xf32, #tpu.memory_space<vmem>>, vector<128x4xf32>
    tpu.vector_store %arg6[%c0_10, %c0_11], %13 {strides = array<i32>} : memref<128x4xf32, #tpu.memory_space<vmem>>, vector<128x4xf32>,
    return
  }
  func.func @transform_0(%arg0: i32) -> (i32, i32) {
    %c0_i32 = arith.constant 0 : i32
    %c0_i32_0 = arith.constant 0 : i32
    return %arg0, %c0_i32 : i32, i32
  }
  func.func @transform_1(%arg0: i32) -> (i32, i32) {
    %c0_i32 = arith.constant 0 : i32
    %c0_i32_0 = arith.constant 0 : i32
    %c0_i32_1 = arith.constant 0 : i32
    return %c0_i32, %c0_i32_0 : i32, i32
  }
  func.func @transform_2(%arg0: i32) -> (i32, i32) {
    %c0_i32 = arith.constant 0 : i32
    %c0_i32_0 = arith.constant 0 : i32
    %c0_i32_1 = arith.constant 0 : i32
    return %c0_i32, %c0_i32_0 : i32, i32
  }
  func.func @transform_3(%arg0: i32) -> (i32, i32) {
    %c0_i32 = arith.constant 0 : i32
    %c0_i32_0 = arith.constant 0 : i32
    %c0_i32_1 = arith.constant 0 : i32
    return %c0_i32, %c0_i32_0 : i32, i32
  }
  func.func @transform_4(%arg0: i32) -> (i32, i32) {
    %c0_i32 = arith.constant 0 : i32
    %c0_i32_0 = arith.constant 0 : i32
    %c0_i32_1 = arith.constant 0 : i32
    return %c0_i32, %c0_i32_0 : i32, i32
  }
  func.func @transform_5(%arg0: i32) -> (i32, i32) {
    %c0_i32 = arith.constant 0 : i32
    %c0_i32_0 = arith.constant 0 : i32
    return %arg0, %c0_i32 : i32, i32
  }
}

</mosaic_0001>

<bundles_post_ra>
// kernel: tpu_custom_call.1
= control target key start
LH: loop header
LB: loop body
LE: loop exit
PB: predicated region body
PF: predicated region fallthrough
CT: control target
= control target key end

     0   :  { %s2668_s18 = smov 0   ;;  %s4510_s0 = inlined_call_operand.vmem [shape: f32[256,16], index: 0, kind: input, shape index: {}]   ;;  %s4511_s1 = inlined_call_operand.vmem [shape: bf16[16,128], index: 1, kind: input, shape index: {}]   ;;  %s4512_s2 = inlined_call_operand.vmem [shape: f32[1,128], index: 2, kind: input, shape index: {}]   ;;  %s4513_s3 = inlined_call_operand.vmem [shape: bf16[128,4], index: 3, kind: input, shape index: {}]   ;;  %s4514_s4 = inlined_call_operand.vmem [shape: f32[1,4], index: 4, kind: input, shape index: {}]   ;;  %s4515_s5 = inlined_call_operand.vmem [shape: f32[256,4], index: 5, kind: output, shape index: {}]  }
   0x1 LB: > { %s2287_s19 = sadd.s32 4294967295, %s2630_s18   ;;  %p2291_p0 = scmp.ge.s32.totalorder %s2630_s18, 1  ;;  %s2630_s18 = sphi %s2668_s18, %s15_s18  }
   0x2   : > { %p188_p1 = scmp.lt.s32.totalorder %s2630_s18, 3 }
   0x4   : > { %p189_p2 = pnand %p2291_p0, %p188_p1 }
   0x6   : > { %192 = sbr.rel (%p189_p2) target bundleno = 868 (0x364), region = 40 }
   0xd   : > { %v2550_v0 = vld [vmem:[%s4511_s1] sm:$0xff]   ;;  %s2292_s22 = sshll.u32 %s2287_s19, 4  ;;  %vm268_vm0 = vcmask 130048  }
   0xe   : > { %p217_p3 = scmp.lt.s32.totalorder %s2292_s22, 31  ;;  %2406 = vmatprep.subr.bf16.mxu0 %v2550_v0  ;;  %v2716_v25 = vld [vmem:[%s4512_s2] ss:$0 sm:$0xff] }
   0xf   : > { %2407 = vmatpush3.bf16.msra.mxu0 %v2550_v0  ;;  %v4528_v0 = vmov 683565275  }
  0x10   : > { %s4763_s22 = smov (!%p217_p3, %s2292_s22), 31 }
  0x11   : > { %s2293_s23 = sshll.u32 %s4763_s22, 3 }
  0x12   : > { %s2687_s26 = scalar_lea.vmem %s4510_s0, %s2293_s23  ;;  %s4473_s29 = scalar_lea.vmem %s4515_s5, %s2293_s23 }
  0x13   : > { %v229_v1 = vld [vmem:[%s2687_s26] sm:$0xff]  ;;  %v230_v2 = vld [vmem:[%s2687_s26 + $0x8] sm:$0xff]  ;;  %v231_v3 = vld [vmem:[%s2687_s26 + $0x10] sm:$0xff] }
  0x14   : > { %v245_v4 = vpack.c.bf16 %v230_v2, %v229_v1  ;;  %v232_v5 = vld [vmem:[%s2687_s26 + $0x18] sm:$0xff]  ;;  %v233_v6 = vld [vmem:[%s2687_s26 + $0x20] sm:$0xff]  ;;  %v234_v7 = vld [vmem:[%s2687_s26 + $0x28] sm:$0xff] }
  0x15   : > { %v246_v8 = vpack.c.bf16 %v232_v5, %v231_v3  ;;  %v247_v9 = vpack.c.bf16 %v234_v7, %v233_v6  ;;  %v235_v10 = vld [vmem:[%s2687_s26 + $0x30] sm:$0xff]  ;;  %v236_v11 = vld [vmem:[%s2687_s26 + $0x38] sm:$0xff]  ;;  %v237_v12 = vld [vmem:[%s2687_s26 + $0x40] sm:$0xff]  ;;  %v4522_v6 = vmov 2131351028  }
  0x16   : > { %2408 = vmatprep.mubr.msk.bf16.mxu0 %vm268_vm0, %v245_v4  ;;  %v238_v13 = vld [vmem:[%s2687_s26 + $0x48] sm:$0xff]  ;;  %v248_v14 = vpack.c.bf16 %v236_v11, %v235_v10  ;;  %v239_v16 = vld [vmem:[%s2687_s26 + $0x50] sm:$0xff]  ;;  %v240_v17 = vld [vmem:[%s2687_s26 + $0x58] sm:$0xff]  ;;  %v4526_v4 = vmov 2475754826  }
  0x17   : > { %2409 = vmatmul.mubr.msk.bf16.vlgmr.msra.gmra.mrb[0].mxu0 %vm268_vm0, %v246_v8  ;;  %v249_v15 = vpack.c.bf16 %v238_v13, %v237_v12  ;;  %v241_v18 = vld [vmem:[%s2687_s26 + $0x60] sm:$0xff]  ;;  %v242_v19 = vld [vmem:[%s2687_s26 + $0x68] sm:$0xff]  ;;  %v250_v20 = vpack.c.bf16 %v240_v17, %v239_v16  ;;  %v243_v22 = vld [vmem:[%s2687_s26 + $0x70] sm:$0xff]  ;;  %v4520_v8 = vmov 2102212464  }
  0x18   : > { %2412 = vmatprep.mubr.msk.bf16.mxu0 %vm268_vm0, %v247_v9  ;;  %v251_v21 = vpack.c.bf16 %v242_v19, %v241_v18  ;;  %v244_v23 = vld [vmem:[%s2687_s26 + $0x78] sm:$0xff]  ;;  %v4540_v10 = vmov 920167782   ;;  %v4532_v19 = vmov 1326507024  }
  0x19   : > { %v252_v24 = vpack.c.bf16 %v244_v23, %v243_v22 }
  0x1f   : > { %2413 = vmatmul.mubr.msk.bf16.gmra.mrb[4].mxu0 %vm268_vm0, %v248_v14 }
  0x20   : > { %2416 = vmatprep.mubr.msk.bf16.mxu0 %vm268_vm0, %v249_v15 }
  0x27   : > { %2417 = vmatmul.mubr.msk.bf16.gmra.mrb[8].mxu0 %vm268_vm0, %v250_v20 }
  0x28   : > { %2420 = vmatprep.mubr.msk.bf16.mxu0 %vm268_vm0, %v251_v21 }
  0x2f   : > { %2421 = vmatmul.mubr.msk.bf16.gmra.mrb[12].mxu0 %vm268_vm0, %v252_v24 }
  0xea   : > { %v2410_v26 = vpop.f32.mrb[0].mxu0 }
  0xeb   : > { %v2719_v27 = vadd.f32 %v2410_v26, %v2716_v25  ;;  %v327_v28 = vpop.f32.mrb[1].mxu0 }
  0xec   : > { %v2722_v29 = vadd.f32 %v2716_v25, %v327_v28  ;;  %v2411_v30 = vpop.f32.mrb[2].mxu0 }
  0xed   : > { %4611 = vst [vmem:[#allocation2_spill] sm:$0xff] %v2719_v27  ;;  %v596_v31 = vand.u32 2147483647, %v2719_v27  ;;  %v599_v32 = vand.u32 2139095040, %v2719_v27  ;;  %v330_v33 = vpop.f32.mrb[3].mxu0  ;;  %v2729_v36 = vadd.f32 %v2411_v30, %v2716_v25 }
  0xee   : > { %v4519_v34 = vand.u32 2147483647, %v2722_v29  ;;  %v393_v35 = vand.u32 2139095040, %v2722_v29  ;;  %v2745_v58 = vadd.f32 %v2716_v25, %v330_v33 }
  0xef   : > { %4612 = vst [vmem:[#allocation3_spill] sm:$0xff] %v2729_v36  ;;  %v600_v37 = vshrl.u32 %v599_v32, 23  ;;  %v603_v38 = vand.u32 8388607, %v596_v31  ;;  %v702_v42 = vand.u32 2139095040, %v2729_v36 }
  0xf0   : > { %v394_v39 = vshrl.u32 %v393_v35, 23  ;;  %v397_v40 = vand.u32 8388607, %v4519_v34  ;;  %4613 = vst [vmem:[#allocation4_spill] sm:$0xff] %v2745_v58  ;;  %v4518_v61 = vand.u32 2147483647, %v2729_v36 }
  0xf1   : > { %v2314_v41 = vadd.s32 4294967169, %v600_v37  ;;  %v703_v46 = vshrl.u32 %v702_v42, 23  ;;  %v604_v48 = vor.u32 8388608, %v603_v38 }
  0xf2   : > { %v2306_v43 = vadd.s32 4294967169, %v394_v39  ;;  %v2736_v44 = vpop.f32.mrb[4].mxu0  ;;  %v398_v49 = vor.u32 8388608, %v397_v40 }
  0xf3   : > { %v606_v45 = vadd.s32 1, %v2314_v41  ;;  %v2738_v47 = vpop.f32.mrb[5].mxu0  ;;  %v2318_v51 = vadd.s32 4294967169, %v703_v46  ;;  %v2747_v59 = vshll.u32 %v604_v48, 8 }
  0xf4   : > { %v400_v50 = vadd.s32 1, %v2306_v43  ;;  %v2740_v52 = vpop.f32.mrb[6].mxu0  ;;  %v2749_v60 = vshll.u32 %v398_v49, 8 }
  0xf5   : > { %vm607_vm1 = vcmp.gt.s32.totalorder %v606_v45, 0  ;;  %v2742_v54 = vpop.f32.mrb[7].mxu0  ;;  %v2752_v62 = vadd.s32 1, %v2318_v51 }
  0xf6   : > { %v608_v53 = vsel %vm607_vm1, %v606_v45, 0  ;;  %vm401_vm2 = vcmp.gt.s32.totalorder %v400_v50, 0 }
  0xf7   : > { %v609_v55 = vshrl.u32 %v608_v53, 5  ;;  %v610_v56 = vand.u32 31, %v608_v53  ;;  %v402_v57 = vsel %vm401_vm2, %v400_v50, 0  ;;  %vm710_vm12 = vcmp.gt.s32.totalorder %v2752_v62, 0 }
  0xf8   : > { %v2755_v2 = vshrl.u32 %v402_v57, 5  ;;  %v404_v3 = vand.u32 31, %v402_v57 }
  0xf9   : > { %v611_v63 = vsub.s32 32, %v610_v56  ;;  %v613_v1 = vshll.u32 %v4528_v0, %v610_v56  ;;  %v616_v5 = vshll.u32 %v4526_v4, %v610_v56  ;;  %v619_v7 = vshll.u32 %v4522_v6, %v610_v56 }
  0xfa   : > { %v622_v9 = vshll.u32 %v4520_v8, %v610_v56  ;;  %v625_v11 = vshll.u32 %v4540_v10, %v610_v56  ;;  %v2761_v12 = vpop.f32.mrb[8].mxu0  ;;  %vm628_vm3 = vcmp.lt.s32.totalorder %v609_v55, 1  ;;  %vm629_vm4 = vcmp.lt.s32.totalorder %v609_v55, 2 }
  0xfb   : > { %v614_v13 = vshrl.u32 %v4526_v4, %v611_v63  ;;  %v617_v14 = vshrl.u32 %v4522_v6, %v611_v63  ;;  %v620_v15 = vshrl.u32 %v4520_v8, %v611_v63  ;;  %v2766_v16 = vpop.f32.mrb[9].mxu0  ;;  %v612_v17 = vshrl.u32 %v4528_v0, %v611_v63 }
  0xfc   : > { %v623_v18 = vshrl.u32 %v4540_v10, %v611_v63  ;;  %v626_v20 = vshrl.u32 %v4532_v19, %v611_v63  ;;  %v405_v24 = vsub.s32 32, %v404_v3  ;;  %vm630_vm5 = vcmp.lt.s32.totalorder %v609_v55, 3  ;;  %v2775_v41 = vpop.f32.mrb[10].mxu0 }
  0xfd   : > { %v615_v21 = vor.u32 %v614_v13, %v613_v1  ;;  %v618_v22 = vor.u32 %v617_v14, %v616_v5  ;;  %v621_v23 = vor.u32 %v620_v15, %v619_v7  ;;  %vm631_vm6 = vcmp.lt.s32.totalorder %v609_v55, 4 }
  0xfe   : > { %v624_v26 = vor.u32 %v623_v18, %v622_v9  ;;  %v627_v28 = vor.u32 %v626_v20, %v625_v11  ;;  %v407_v40 = vshll.u32 %v4528_v0, %v404_v3  ;;  %v408_v45 = vshrl.u32 %v4526_v4, %v405_v24 }
  0xff   : > { %v632_v30 = vsel %vm628_vm3, %v612_v17, %v615_v21  ;;  %v633_v32 = vsel %vm631_vm6, %v621_v23, 2102212464  ;;  %v636_v33 = vsel %vm628_vm3, %v615_v21, %v618_v22  ;;  %v640_v35 = vsel %vm628_vm3, %v618_v22, %v621_v23 }
 0x100   : > { %v634_v37 = vsel %vm630_vm5, %v618_v22, %v633_v32  ;;  %v637_v38 = vsel %vm631_vm6, %v624_v26, 920167782  ;;  %v641_v39 = vsel %vm631_vm6, %v627_v28, 1326507024  ;;  %v410_v46 = vshll.u32 %v4526_v4, %v404_v3 }
 0x101   : > { %v638_v42 = vsel %vm630_vm5, %v621_v23, %v637_v38  ;;  %v642_v43 = vsel %vm630_vm5, %v624_v26, %v641_v39  ;;  %v635_v48 = vsel %vm629_vm4, %v632_v30, %v634_v37  ;;  %v411_v51 = vshrl.u32 %v4522_v6, %v405_v24 }
 0x102   : > { %v639_v49 = vsel %vm629_vm4, %v636_v33, %v638_v42  ;;  %v643_v50 = vsel %vm629_vm4, %v640_v35, %v642_v43  ;;  %v409_v1 = vor.u32 %v408_v45, %v407_v40  ;;  %v413_v7 = vshll.u32 %v4522_v6, %v404_v3 }
 0x103   : > { %v2784_v53 = vmul.u32.u64.low %v2747_v59, %v643_v50  ;;  %v2785_v56 = vmul.u32.u64.high %v2747_v59, %v643_v50, %v2784_v53  ;;  %v2788_v57 = vmul.u32.u64.low %v2747_v59, %v639_v49  ;;  %v2789_v63 = vmul.u32.u64.high %v2747_v59, %v639_v49, %v2788_v57 }
 0x104   : > { %v412_v5 = vor.u32 %v411_v51, %v410_v46  ;;  %v414_v9 = vshrl.u32 %v4520_v8, %v405_v24  ;;  %v406_v55 = vshrl.u32 %v4528_v0, %v405_v24  ;;  %v416_v11 = vshll.u32 %v4520_v8, %v404_v3 }
 0x105   : > { %v417_v13 = vshrl.u32 %v4540_v10, %v405_v24  ;;  %v420_v14 = vshrl.u32 %v4532_v19, %v405_v24  ;;  %v651_v15 = vmul.u32 %v2747_v59, %v635_v48  ;;  %v419_v18 = vshll.u32 %v4540_v10, %v404_v3 }
 0x106   : > { %v415_v17 = vor.u32 %v414_v9, %v413_v7  ;;  %vm422_vm7 = vcmp.lt.s32.totalorder %v2755_v2, 1  ;;  %vm653_vm8 = vc.u32 %v2785_v56, %v2788_v57  ;;  %v654_v20 = vadd.s32 1, %v2789_v63 }
 0x107   : > { %v418_v21 = vor.u32 %v417_v13, %v416_v11  ;;  %vm423_vm9 = vcmp.lt.s32.totalorder %v2755_v2, 2  ;;  %v421_v22 = vor.u32 %v420_v14, %v419_v18  ;;  %vm424_vm10 = vcmp.lt.s32.totalorder %v2755_v2, 3 }
 0x108   : > { %vm425_vm11 = vcmp.lt.s32.totalorder %v2755_v2, 4  ;;  %v430_v23 = vsel %vm422_vm7, %v409_v1, %v412_v5  ;;  %v655_v59 = vsel %vm653_vm8, %v654_v20, %v2789_v63  ;;  %v434_v26 = vsel %vm422_vm7, %v412_v5, %v415_v17 }
 0x109   : > { %v427_v24 = vsel %vm425_vm11, %v415_v17, 2102212464  ;;  %v431_v3 = vsel %vm425_vm11, %v418_v21, 920167782  ;;  %v656_v28 = vadd.s32 %v655_v59, %v651_v15  ;;  %v426_v30 = vsel %vm422_vm7, %v406_v55, %v409_v1 }
 0x10a   : > { %v432_v32 = vsel %vm424_vm10, %v415_v17, %v431_v3  ;;  %v435_v33 = vsel %vm425_vm11, %v421_v22, 1326507024  ;;  %v428_v35 = vsel %vm424_vm10, %v412_v5, %v427_v24  ;;  %v706_v48 = vand.u32 8388607, %v4518_v61  ;;  %v2846_v24 = vpop.f32.mrb[11].mxu0 }
 0x10b   : > { %v433_v37 = vsel %vm423_vm9, %v430_v23, %v432_v32  ;;  %v436_v38 = vsel %vm424_vm10, %v418_v21, %v435_v33  ;;  %v657_v39 = vadd.s32 536870912, %v656_v28  ;;  %v711_v49 = vsel %vm710_vm12, %v2752_v62, 0 }
 0x10c   : > { %v437_v40 = vsel %vm423_vm9, %v434_v26, %v436_v38  ;;  %v2814_v42 = vmul.u32.u64.low %v2749_v60, %v433_v37  ;;  %v2815_v43 = vmul.u32.u64.high %v2749_v60, %v433_v37, %v2814_v42  ;;  %v429_v51 = vsel %vm423_vm9, %v426_v30, %v428_v35 }
 0x10d   : > { %v2819_v45 = vmul.u32.u64.low %v2749_v60, %v437_v40  ;;  %v2820_v46 = vmul.u32.u64.high %v2749_v60, %v437_v40, %v2819_v45  ;;  %v2825_v50 = vshrl.u32 %v657_v39, 30  ;;  %v713_v53 = vand.u32 31, %v711_v49 }
 0x10e   : > { %v448_v1 = vadd.s32 1, %v2815_v43  ;;  %v496_v7 = vand.u32 2139095040, %v2745_v58  ;;  %v445_v9 = vmul.u32 %v2749_v60, %v429_v51  ;;  %v707_v55 = vor.u32 8388608, %v706_v48 }
 0x10f   : > { %v659_v63 = vshll.u32 %v2825_v50, 30  ;;  %v714_v5 = vsub.s32 32, %v713_v53  ;;  %vm447_vm13 = vc.u32 %v2820_v46, %v2814_v42  ;;  %v716_v2 = vshll.u32 %v4528_v0, %v713_v53 }
 0x110   : > { %v449_v11 = vsel %vm447_vm13, %v448_v1, %v2815_v43  ;;  %v719_v18 = vshll.u32 %v4526_v4, %v713_v53  ;;  %v497_v20 = vshrl.u32 %v496_v7, 23  ;;  %v712_v21 = vshrl.u32 %v711_v49, 5 }
 0x111   : > { %v660_v62 = vsub.s32 %v656_v28, %v659_v63  ;;  %v2836_v13 = vadd.s32 %v449_v11, %v445_v9  ;;  %v717_v14 = vshrl.u32 %v4526_v4, %v714_v5  ;;  %v720_v15 = vshrl.u32 %v4522_v6, %v714_v5 }
 0x112   : > { %v723_v60 = vshrl.u32 %v4520_v8, %v714_v5  ;;  %v722_v23 = vshll.u32 %v4522_v6, %v713_v53  ;;  %v2844_v59 = vshll.u32 %v707_v55, 8  ;;  %v725_v28 = vshll.u32 %v4520_v8, %v713_v53 }
 0x113   : > { %v662_v17 = vsub.s32 0, %v660_v62  ;;  %v718_v22 = vor.u32 %v717_v14, %v716_v2  ;;  %v721_v26 = vor.u32 %v720_v15, %v719_v18  ;;  %v726_v30 = vshrl.u32 %v4540_v10, %v714_v5 }
 0x114   : > { %v451_v32 = vadd.s32 536870912, %v2836_v13  ;;  %v724_v33 = vor.u32 %v723_v60, %v722_v23  ;;  %v728_v35 = vshll.u32 %v4540_v10, %v713_v53  ;;  %v729_v37 = vshrl.u32 %v4532_v19, %v714_v5 }
 0x115   : > { %v2315_v3 = vmin.u32 %v662_v17, %v660_v62  ;;  %v652_v38 = vadd.s32 %v2788_v57, %v2785_v56  ;;  %v727_v40 = vor.u32 %v726_v30, %v725_v28  ;;  %v2310_v43 = vadd.s32 4294967169, %v497_v20 }
 0x116   : > { %v715_v45 = vshrl.u32 %v4528_v0, %v714_v5  ;;  %v730_v48 = vor.u32 %v729_v37, %v728_v35  ;;  %vm731_vm14 = vcmp.lt.s32.totalorder %v712_v21, 1  ;;  %vm734_vm15 = vcmp.lt.s32.totalorder %v712_v21, 4 }
 0x117   : > { %v664_v39 = vclz %v2315_v3  ;;  %vm733_vm0 = vcmp.lt.s32.totalorder %v712_v21, 3  ;;  %v739_v51 = vsel %vm731_vm14, %v718_v22, %v721_v26  ;;  %v740_v63 = vsel %vm734_vm15, %v727_v40, 920167782 }
 0x118   : > { %v2856_v1 = vshrl.u32 %v451_v32, 30  ;;  %v736_v53 = vsel %vm734_vm15, %v724_v33, 2102212464  ;;  %v741_v7 = vsel %vm733_vm0, %v724_v33, %v740_v63  ;;  %v743_v9 = vsel %vm731_vm14, %v721_v26, %v724_v33 }
 0x119   : > { %v2316_v49 = vadd.s32 4294967294, %v664_v39  ;;  %vm732_vm2 = vcmp.lt.s32.totalorder %v712_v21, 2  ;;  %v735_v56 = vsel %vm731_vm14, %v715_v45, %v718_v22  ;;  %v744_v57 = vsel %vm734_vm15, %v730_v48, 1326507024 }
 0x11a   : > { %v742_v5 = vsel %vm732_vm2, %v739_v51, %v741_v7  ;;  %v745_v11 = vsel %vm733_vm0, %v727_v40, %v744_v57  ;;  %v503_v2 = vadd.s32 1, %v2310_v43  ;;  %v737_v17 = vsel %vm733_vm0, %v721_v26, %v736_v53 }
 0x11b   : > { %vm2317_vm1 = vcmp.lt.s32.totalorder %v2316_v49, 0  ;;  %v746_v18 = vsel %vm732_vm2, %v743_v9, %v745_v11  ;;  %v2868_v28 = vmul.u32.u64.low %v2844_v59, %v742_v5  ;;  %v2869_v30 = vmul.u32.u64.high %v2844_v59, %v742_v5, %v2868_v28 }
 0x11c   : > { %v667_v55 = vsel %vm2317_vm1, 0, %v2316_v49  ;;  %v2864_v20 = vmul.u32.u64.low %v2844_v59, %v746_v18  ;;  %v2865_v23 = vmul.u32.u64.high %v2844_v59, %v746_v18, %v2864_v20  ;;  %vm504_vm3 = vcmp.gt.s32.totalorder %v503_v2, 0 }
 0x11d   : > { %v668_v14 = vsub.s32 32, %v667_v55  ;;  %v672_v15 = vsub.s32 4294967266, %v667_v55  ;;  %v669_v60 = vshll.u32 %v660_v62, %v667_v55  ;;  %v453_v32 = vshll.u32 %v2856_v1, 30 }
 0x11e   : > { %v4517_v33 = vand.u32 2147483647, %v2745_v58  ;;  %v505_v26 = vsel %vm504_vm3, %v503_v2, 0  ;;  %v738_v62 = vsel %vm732_vm2, %v735_v56, %v737_v17  ;;  %vm756_vm4 = vc.u32 %v2865_v23, %v2868_v28 }
 0x11f   : > { %v670_v22 = vshrl.u32 %v652_v38, %v668_v14  ;;  %v673_v3 = vadd.s32 127, %v672_v15  ;;  %v507_v39 = vand.u32 31, %v505_v26  ;;  %v757_v40 = vadd.s32 1, %v2869_v30 }
 0x120   : > { %v2879_v43 = vsub.s32 %v2836_v13, %v453_v32  ;;  %v754_v45 = vmul.u32 %v2844_v59, %v738_v62  ;;  %v500_v48 = vand.u32 8388607, %v4517_v33  ;;  %vm2887_vm5 = vcmp.le.f32.partialorder %v596_v31, 0.7853982 }
 0x121   : > { %v671_v35 = vor.u32 %v670_v22, %v669_v60  ;;  %v674_v37 = vshll.u32 %v673_v3, 23  ;;  %v758_v21 = vsel %vm756_vm4, %v757_v40, %v2869_v30  ;;  %v508_v63 = vsub.s32 32, %v507_v39  ;;  %v2910_v30 = vpop.f32.mrb[12].mxu0 }
 0x122   : > { %v759_v7 = vadd.s32 %v758_v21, %v754_v45  ;;  %vm598_vm6 = vcmp.lt.s32.totalorder %v2719_v27, 0  ;;  %v456_v13 = vsub.s32 0, %v2879_v43  ;;  %v501_v56 = vor.u32 8388608, %v500_v48 }
 0x123   : > { %v675_v38 = vor.u32 4788187, %v674_v37  ;;  %v678_v51 = vcvt.s32.f32 %v671_v35  ;;  %v511_v57 = vshrl.u32 %v4526_v4, %v508_v63  ;;  %v514_v55 = vshrl.u32 %v4522_v6, %v508_v63 }
 0x124   : > { %v510_v5 = vshll.u32 %v4528_v0, %v507_v39  ;;  %v513_v11 = vshll.u32 %v4526_v4, %v507_v39  ;;  %v517_v2 = vshrl.u32 %v4520_v8, %v508_v63  ;;  %v520_v31 = vshrl.u32 %v4540_v10, %v508_v63 }
 0x125   : > { %v676_v49 = vand.u32 2147483647, %v675_v38  ;;  %v760_v15 = vadd.s32 536870912, %v759_v7  ;;  %v519_v17 = vshll.u32 %v4520_v8, %v507_v39  ;;  %v523_v18 = vshrl.u32 %v4532_v19, %v508_v63 }
 0x126   : > { %v2307_v20 = vmin.u32 %v456_v13, %v2879_v43  ;;  %v506_v22 = vshrl.u32 %v505_v26, 5  ;;  %v516_v3 = vshll.u32 %v4522_v6, %v507_v39  ;;  %v512_v32 = vor.u32 %v511_v57, %v510_v5 }
 0x127   : > { %v679_v53 = vmul.f32 %v678_v51, %v676_v49  ;;  %v515_v35 = vor.u32 %v514_v55, %v513_v11  ;;  %v521_v37 = vor.u32 %v520_v31, %v519_v17  ;;  %v522_v62 = vshll.u32 %v4540_v10, %v507_v39 }
 0x128   : > { %v518_v38 = vor.u32 %v517_v2, %v516_v3  ;;  %v2913_v40 = vshrl.u32 %v760_v15, 30  ;;  %v458_v48 = vclz %v2307_v20  ;;  %vm525_vm7 = vcmp.lt.s32.totalorder %v506_v22, 1 }
 0x129   : > { %v680_v59 = vxor.u32 2147483648, %v679_v53  ;;  %v524_v45 = vor.u32 %v523_v18, %v522_v62  ;;  %vm528_vm8 = vcmp.lt.s32.totalorder %v506_v22, 4  ;;  %v2917_v49 = vadd.f32 %v2736_v44, %v2716_v25 }
 0x12a   : > { %vm527_vm9 = vcmp.lt.s32.totalorder %v506_v22, 3  ;;  %v533_v26 = vsel %vm525_vm7, %v512_v32, %v515_v35  ;;  %v534_v51 = vsel %vm528_vm8, %v521_v37, 920167782  ;;  %v541_v21 = vshll.u32 %v501_v56, 8 }
 0x12b   : > { %v681_v14 = vsel %vm598_vm6, %v680_v59, %v679_v53  ;;  %4616 = vst [vmem:[#allocation5_spill] sm:$0xff] %v2917_v49  ;;  %v509_v53 = vshrl.u32 %v4528_v0, %v508_v63  ;;  %vm526_vm10 = vcmp.lt.s32.totalorder %v506_v22, 2  ;;  %v530_v13 = vsel %vm528_vm8, %v518_v38, 2102212464 }
 0x12c   : > { %v2906_v60 = vsel %vm2887_vm5, %v2719_v27, %v681_v14  ;;  %v535_v39 = vsel %vm527_vm9, %v518_v38, %v534_v51  ;;  %v762_v59 = vshll.u32 %v2913_v40, 30  ;;  %v537_v55 = vsel %vm525_vm7, %v515_v35, %v518_v38 }
 0x12d   : > { %v536_v57 = vsel %vm526_vm10, %v533_v26, %v535_v39  ;;  %v538_v5 = vsel %vm528_vm8, %v524_v45, 1326507024  ;;  %v529_v11 = vsel %vm525_vm7, %v509_v53, %v512_v32  ;;  %v531_v31 = vsel %vm527_vm9, %v515_v35, %v530_v13 }
 0x12e   : > { %v539_v2 = vsel %vm527_vm9, %v521_v37, %v538_v5  ;;  %v2923_v14 = vmul.u32.u64.low %v541_v21, %v536_v57  ;;  %v2924_v15 = vmul.u32.u64.high %v541_v21, %v536_v57, %v2923_v14  ;;  %v2308_v56 = vadd.s32 4294967294, %v458_v48 }
 0x12f   : > { %v540_v44 = vsel %vm526_vm10, %v537_v55, %v539_v2  ;;  %v2930_v18 = vsub.s32 %v759_v7, %v762_v59  ;;  %v1011_v20 = vand.u32 2139095040, %v2917_v49  ;;  %v532_v3 = vsel %vm526_vm10, %v529_v11, %v531_v31 }
 0x130   : > { %v2927_v63 = vmul.u32.u64.low %v541_v21, %v540_v44  ;;  %v2928_v17 = vmul.u32.u64.high %v541_v21, %v540_v44, %v2927_v63  ;;  %v551_v32 = vadd.s32 1, %v2924_v15  ;;  %vm2309_vm11 = vcmp.lt.s32.totalorder %v2308_v56, 0 }
 0x131   : > { %v1012_v37 = vshrl.u32 %v1011_v20, 23  ;;  %v2937_v35 = vadd.f32 %v2740_v52, %v2716_v25  ;;  %v765_v62 = vsub.s32 0, %v2930_v18  ;;  %v548_v38 = vmul.u32 %v541_v21, %v532_v3  ;;  %v2948_v21 = vpop.f32.mrb[13].mxu0 }
 0x132   : > { %vm550_vm12 = vc.u32 %v2928_v17, %v2923_v14  ;;  %v2943_v26 = vsel %vm2309_vm11, 0, %v2308_v56  ;;  %v4516_v51 = vand.u32 2147483647, %v2917_v49  ;;  %v446_v61 = vadd.s32 %v2814_v42, %v2820_v46 }
 0x133   : > { %v2330_v7 = vadd.s32 4294967169, %v1012_v37  ;;  %v552_v45 = vsel %vm550_vm12, %v551_v32, %v2924_v15  ;;  %v2319_v53 = vmin.u32 %v765_v62, %v2930_v18  ;;  %v1114_v52 = vand.u32 2139095040, %v2937_v35 }
 0x134   : > { %v553_v48 = vadd.s32 %v552_v45, %v548_v38  ;;  %v466_v55 = vsub.s32 4294967266, %v2943_v26  ;;  %v1015_v11 = vand.u32 8388607, %v4516_v51  ;;  %vm392_vm8 = vcmp.lt.s32.totalorder %v2722_v29, 0 }
 0x135   : > { %v1018_v22 = vadd.s32 1, %v2330_v7  ;;  %v767_v5 = vclz %v2319_v53  ;;  %v1115_v31 = vshrl.u32 %v1114_v52, 23  ;;  %2559 = vcosq.f32 %v2906_v60 }
 0x136   : > { %v554_v13 = vadd.s32 536870912, %v553_v48  ;;  %v1016_v53 = vor.u32 8388608, %v1015_v11  ;;  %2561 = vsinq.f32 %v2906_v60 }
 0x137   : > { %vm1019_vm13 = vcmp.gt.s32.totalorder %v1018_v22, 0 }
 0x138   : > { %v1020_v39 = vsel %vm1019_vm13, %v1018_v22, 0  ;;  %v2950_v59 = vshrl.u32 %v554_v13, 30  ;;  %v2320_v22 = vadd.s32 4294967294, %v767_v5  ;;  %v1056_v42 = vshll.u32 %v1016_v53, 8 }
 0x139   : > { %v1022_v57 = vand.u32 31, %v1020_v39  ;;  %v2956_v15 = vshrl.u32 %v1020_v39, 5  ;;  %vm701_vm13 = vcmp.lt.s32.totalorder %v2729_v36, 0 }
 0x13a   : > { %4617 = vst [vmem:[#allocation6_spill] sm:$0xff] %v2950_v59  ;;  %v556_v44 = vshll.u32 %v2950_v59, 30  ;;  %vm2321_vm0 = vcmp.lt.s32.totalorder %v2320_v22, 0 }
 0x13b   : > { %v1023_v2 = vsub.s32 32, %v1022_v57  ;;  %v1025_v56 = vshll.u32 %v4528_v0, %v1022_v57  ;;  %v1028_v63 = vshll.u32 %v4526_v4, %v1022_v57  ;;  %v1031_v32 = vshll.u32 %v4522_v6, %v1022_v57 }
 0x13c   : > { %v1034_v37 = vshll.u32 %v4520_v8, %v1022_v57  ;;  %v1037_v7 = vshll.u32 %v4540_v10, %v1022_v57  ;;  %v2970_v34 = vsub.s32 %v553_v48, %v556_v44  ;;  %vm1040_vm14 = vcmp.lt.s32.totalorder %v2956_v15, 1 }
 0x13d   : > { %v1026_v20 = vshrl.u32 %v4526_v4, %v1023_v2  ;;  %v1029_v3 = vshrl.u32 %v4522_v6, %v1023_v2  ;;  %v1032_v62 = vshrl.u32 %v4520_v8, %v1023_v2  ;;  %v1035_v38 = vshrl.u32 %v4540_v10, %v1023_v2 }
 0x13e   : > { %v1038_v45 = vshrl.u32 %v4532_v19, %v1023_v2  ;;  %v2334_v8 = vadd.s32 4294967169, %v1115_v31  ;;  %v462_v6 = vsub.s32 32, %v2943_v26  ;;  %v467_v57 = vadd.s32 127, %v466_v55 }
 0x13f   : > { %v1027_v13 = vor.u32 %v1026_v20, %v1025_v56  ;;  %v1030_v52 = vor.u32 %v1029_v3, %v1028_v63  ;;  %v1033_v39 = vor.u32 %v1032_v62, %v1031_v32  ;;  %v1036_v51 = vor.u32 %v1035_v38, %v1034_v37 }
 0x140   : > { %v1039_v33 = vor.u32 %v1038_v45, %v1037_v7  ;;  %vm1043_vm15 = vcmp.lt.s32.totalorder %v2956_v15, 4  ;;  %vm1042_vm1 = vcmp.lt.s32.totalorder %v2956_v15, 3  ;;  %vm1041_vm2 = vcmp.lt.s32.totalorder %v2956_v15, 2 }
 0x141   : > { %v1048_v5 = vsel %vm1040_vm14, %v1027_v13, %v1030_v52  ;;  %v1049_v11 = vsel %vm1043_vm15, %v1036_v51, 920167782  ;;  %v1052_v48 = vsel %vm1040_vm14, %v1030_v52, %v1033_v39  ;;  %v559_v31 = vsub.s32 0, %v2970_v34 }
 0x142   : > { %v1050_v46 = vsel %vm1042_vm1, %v1033_v39, %v1049_v11  ;;  %v1053_v55 = vsel %vm1043_vm15, %v1039_v33, 1326507024  ;;  %v1121_v63 = vadd.s32 1, %v2334_v8  ;;  %v464_v20 = vshrl.u32 %v446_v61, %v462_v6  ;;  %v3020_v11 = vpop.f32.mrb[14].mxu0 }
 0x143   : > { %v1051_v44 = vsel %vm1041_vm2, %v1048_v5, %v1050_v46  ;;  %v1054_v56 = vsel %vm1042_vm1, %v1036_v51, %v1053_v55  ;;  %v468_v62 = vshll.u32 %v467_v57, 23  ;;  %v2999_v33 = vsel %vm2321_vm0, 0, %v2320_v22 }
 0x144   : > { %v1055_v3 = vsel %vm1041_vm2, %v1052_v48, %v1054_v56  ;;  %v2994_v32 = vmul.u32.u64.low %v1056_v42, %v1051_v44  ;;  %v2995_v37 = vmul.u32.u64.high %v1056_v42, %v1051_v44, %v2994_v32  ;;  %v1045_v45 = vsel %vm1043_vm15, %v1033_v39, 2102212464 }
 0x145   : > { %v3001_v38 = vmul.u32.u64.low %v1056_v42, %v1055_v3  ;;  %v3002_v7 = vmul.u32.u64.high %v1056_v42, %v1055_v3, %v3001_v38  ;;  %v463_v61 = vshll.u32 %v2879_v43, %v2943_v26  ;;  %v2311_v6 = vmin.u32 %v559_v31, %v2970_v34 }
 0x146   : > { %v1024_v8 = vshrl.u32 %v4528_v0, %v1023_v2  ;;  %vm1122_vm3 = vcmp.gt.s32.totalorder %v1121_v63, 0  ;;  %v775_v51 = vsub.s32 4294967266, %v2999_v33  ;;  %v469_v57 = vor.u32 4788187, %v468_v62 }
 0x147   : > { %v465_v53 = vor.u32 %v464_v20, %v463_v61  ;;  %v1046_v5 = vsel %vm1042_vm1, %v1030_v52, %v1045_v45  ;;  %v1066_v39 = vadd.s32 1, %v2995_v37  ;;  %v3018_v43 = vadd.f32 %v2716_v25, %v2738_v47 }
 0x148   : > { %v1044_v22 = vsel %vm1040_vm14, %v1024_v8, %v1027_v13  ;;  %v1123_v26 = vsel %vm1122_vm3, %v1121_v63, 0  ;;  %v771_v2 = vsub.s32 32, %v2999_v33  ;;  %v561_v46 = vclz %v2311_v6 }
 0x149   : > { %4618 = vst [vmem:[#allocation7_spill] sm:$0xff] %v3018_v43  ;;  %vm1065_vm4 = vc.u32 %v3002_v7, %v2994_v32  ;;  %v776_v48 = vadd.s32 127, %v775_v51  ;;  %v1047_v13 = vsel %vm1041_vm2, %v1044_v22, %v1046_v5  ;;  %v1125_v52 = vand.u32 31, %v1123_v26 }
 0x14a   : > { %v682_v55 = vsub.s32 4, %v2825_v50  ;;  %v470_v31 = vand.u32 2147483647, %v469_v57  ;;  %v472_v44 = vcvt.s32.f32 %v465_v53  ;;  %v755_v47 = vadd.s32 %v2868_v28, %v2865_v23 }
 0x14b   : > { %v1067_v56 = vsel %vm1065_vm4, %v1066_v39, %v2995_v37  ;;  %v805_v63 = vand.u32 2139095040, %v3018_v43  ;;  %v4524_v20 = vand.u32 2147483647, %v2937_v35  ;;  %v3033_v3 = vsub.s32 32, %v1125_v52 }
 0x14c   : > { %v772_v15 = vshll.u32 %v2930_v18, %v2999_v33  ;;  %v773_v62 = vshrl.u32 %v755_v47, %v771_v2  ;;  %v2312_v38 = vadd.s32 4294967294, %v561_v46  ;;  %v1063_v45 = vmul.u32 %v1056_v42, %v1047_v13 }
 0x14d   : > { %v777_v61 = vshll.u32 %v776_v48, 23  ;;  %v1129_v6 = vshrl.u32 %v4526_v4, %v3033_v3  ;;  %v4619_v23 = vmov 2131351028   ;;  %v4620_v37 = vmov 2102212464  }
 0x14e   : > { %v1132_v28 = vshrl.u32 %v4619_v23, %v3033_v3  ;;  %v1135_v8 = vshrl.u32 %v4620_v37, %v3033_v3  ;;  %v3043_v51 = vadd.s32 %v1067_v56, %v1063_v45  ;;  %v3045_v53 = vshrl.u32 %v1123_v26, 5 }
 0x14f   : > { %v1137_v57 = vshll.u32 %v4620_v37, %v1125_v52  ;;  %v1138_v18 = vshrl.u32 %v4540_v10, %v3033_v3  ;;  %v1118_v42 = vand.u32 8388607, %v4524_v20  ;;  %v1128_v33 = vshll.u32 %v4528_v0, %v1125_v52 }
 0x150   : > { %v1131_v22 = vshll.u32 %v4526_v4, %v1125_v52  ;;  %v1134_v5 = vshll.u32 %v4619_v23, %v1125_v52  ;;  %vm2313_vm7 = vcmp.lt.s32.totalorder %v2312_v38, 0  ;;  %v1140_v2 = vshll.u32 %v4540_v10, %v1125_v52 }
 0x151   : > { %v1139_v39 = vor.u32 %v1138_v18, %v1137_v57  ;;  %v1141_v26 = vshrl.u32 %v4532_v19, %v3033_v3  ;;  %v778_v46 = vor.u32 4788187, %v777_v61  ;;  %v3058_v48 = vor.u32 %v1129_v6, %v1128_v33 }
 0x152   : > { %v3060_v13 = vor.u32 %v1132_v28, %v1131_v22  ;;  %v1136_v47 = vor.u32 %v1135_v8, %v1134_v5  ;;  %v683_v56 = vsel %vm598_vm6, %v682_v55, %v2825_v50  ;;  %v1069_v45 = vadd.s32 536870912, %v3043_v51 }
 0x153   : > { %v1142_v57 = vor.u32 %v1141_v26, %v1140_v2  ;;  %vm1146_vm9 = vcmp.lt.s32.totalorder %v3045_v53, 4  ;;  %v473_v52 = vmul.f32 %v472_v44, %v470_v31  ;;  %v774_v18 = vor.u32 %v773_v62, %v772_v15 }
 0x154   : > { %v3068_v20 = vsel %vm2313_vm7, 0, %v2312_v38  ;;  %v1152_v61 = vsel %vm1146_vm9, %v1139_v39, 920167782  ;;  %v806_v6 = vshrl.u32 %v805_v63, 23  ;;  %v1119_v28 = vor.u32 8388608, %v1118_v42 }
 0x155   : > { %vm1143_vm10 = vcmp.lt.s32.totalorder %v3045_v53, 1  ;;  %vm1145_vm6 = vcmp.lt.s32.totalorder %v3045_v53, 3  ;;  %v4621_v50 = vand.u32 2147483647, %v2722_v29  ;;  %v779_v8 = vand.u32 2147483647, %v778_v46 }
 0x156   : > { %v1151_v31 = vsel %vm1143_vm10, %v3058_v48, %v3060_v13  ;;  %v1153_v44 = vsel %vm1145_vm6, %v1136_v47, %v1152_v61  ;;  %v1156_v63 = vsel %vm1146_vm9, %v1142_v57, 1326507024  ;;  %v569_v15 = vsub.s32 4294967266, %v3068_v20 }
 0x157   : > { %vm3076_vm11 = vcmp.le.f32.partialorder %v4621_v50, 0.7853982  ;;  %v3089_v62 = vshrl.u32 %v1069_v45, 30  ;;  %v1155_v38 = vsel %vm1143_vm10, %v3060_v13, %v1136_v47  ;;  %v1157_v42 = vsel %vm1145_vm6, %v1139_v39, %v1156_v63 }
 0x158   : > { %v474_v33 = vxor.u32 2147483648, %v473_v52  ;;  %v781_v22 = vcvt.s32.f32 %v774_v18  ;;  %vm1144_vm12 = vcmp.lt.s32.totalorder %v3045_v53, 2  ;;  %v3099_v5 = vadd.f32 %v2761_v12, %v2716_v25 }
 0x159   : > { %4624 = vst [vmem:[#allocation8_spill] sm:$0xff] %v3089_v62  ;;  %v785_v2 = vsub.s32 4, %v2913_v40  ;;  %v2322_v26 = vadd.s32 4294967169, %v806_v6  ;;  %v1154_v46 = vsel %vm1144_vm12, %v1151_v31, %v1153_v44  ;;  %v1158_v39 = vsel %vm1144_vm12, %v1155_v38, %v1157_v42 }
 0x15a   : > { %v782_v45 = vmul.f32 %v781_v22, %v779_v8  ;;  %v3107_v57 = vshll.u32 %v1119_v28, 8  ;;  %v1423_v18 = vand.u32 2139095040, %v3099_v5  ;;  %v685_v12 = vsel %vm2887_vm5, 0, %v683_v56 }
 0x15b   : > { %v4625_v61 = vand.u32 2147483647, %v2729_v36  ;;  %v570_v6 = vadd.s32 127, %v569_v15  ;;  %v1071_v31 = vshll.u32 %v3089_v62, 30  ;;  %v475_v8 = vsel %vm392_vm8, %v474_v33, %v473_v52  ;;  %v3133_v15 = vpop.f32.mrb[15].mxu0 }
 0x15c   : > { %v3122_v28 = vmul.u32.u64.low %v3107_v57, %v1154_v46  ;;  %v3123_v44 = vmul.u32.u64.high %v3107_v57, %v1154_v46, %v3122_v28  ;;  %v1424_v63 = vshrl.u32 %v1423_v18, 23  ;;  %v786_v9 = vsel %vm701_vm13, %v785_v2, %v2913_v40 }
 0x15d   : > { %vm3114_vm14 = vcmp.le.f32.partialorder %v4625_v61, 0.7853982  ;;  %v812_v56 = vadd.s32 1, %v2322_v26  ;;  %v3130_v38 = vmul.u32.u64.low %v3107_v57, %v1158_v39  ;;  %v3131_v42 = vmul.u32.u64.high %v3107_v57, %v1158_v39, %v3130_v38 }
 0x15e   : > { %v783_v22 = vxor.u32 2147483648, %v782_v45  ;;  %v565_v52 = vsub.s32 32, %v3068_v20  ;;  %v1148_v33 = vsel %vm1146_vm9, %v1136_v47, 2102212464  ;;  %v2346_v46 = vadd.s32 4294967169, %v1424_v63 }
 0x15f   : > { %v478_v18 = vsel %vm3076_vm11, %v2722_v29, %v475_v8  ;;  %v571_v61 = vshll.u32 %v570_v6, 23  ;;  %v3142_v40 = vsub.s32 %v3043_v51, %v1071_v31  ;;  %v1127_v2 = vshrl.u32 %v4528_v0, %v3033_v3 }
 0x160   : > { %v3147_v26 = vand.u32 3, %v685_v12  ;;  %v549_v39 = vadd.s32 %v2923_v14, %v2928_v17  ;;  %v1430_v47 = vadd.s32 1, %v2346_v46  ;;  %v788_v8 = vsel %vm3114_vm14, 0, %v786_v9 }
 0x161   : > { %v1147_v51 = vsel %vm1143_vm10, %v1127_v2, %v3058_v48  ;;  %v1149_v3 = vsel %vm1145_vm6, %v3060_v13, %v1148_v33  ;;  %2563 = vcosq.f32 %v478_v18  ;;  %v784_v12 = vsel %vm701_vm13, %v783_v22, %v782_v45 }
 0x162   : > { %4628 = vst [vmem:[#allocation9_spill] sm:$0xff] %v3147_v26  ;;  %v567_v6 = vshrl.u32 %v549_v39, %v565_v52  ;;  %vm813_vm5 = vcmp.gt.s32.totalorder %v812_v56, 0  ;;  %v566_v60 = vshll.u32 %v2970_v34, %v3068_v20  ;;  %v572_v14 = vor.u32 4788187, %v571_v61 }
 0x163   : > { %v1074_v17 = vsub.s32 0, %v3142_v40  ;;  %vm1431_vm15 = vcmp.gt.s32.totalorder %v1430_v47, 0  ;;  %v1150_v48 = vsel %vm1144_vm12, %v1147_v51, %v1149_v3  ;;  %v1169_v31 = vadd.s32 1, %v3123_v44 }
 0x164   : > { %v4525_v13 = vand.u32 2147483647, %v3099_v5  ;;  %v1432_v63 = vsel %vm1431_vm15, %v1430_v47, 0  ;;  %2565 = vsinq.f32 %v478_v18  ;;  %v3169_v9 = vand.u32 3, %v788_v8  ;;  %v3197_v47 = vpop.eup %2559 }
 0x165   : > { %vm1168_vm0 = vc.u32 %v3131_v42, %v3122_v28  ;;  %v1434_v45 = vand.u32 31, %v1432_v63  ;;  %v787_v34 = vsel %vm3114_vm14, %v2729_v36, %v784_v12  ;;  %v568_v20 = vor.u32 %v567_v6, %v566_v60  ;;  %4631 = vst [vmem:[#allocation12_spill] sm:$0xff] %v3197_v47 }
 0x166   : > { %4629 = vst [vmem:[#allocation10_spill] sm:$0xff] %v3169_v9  ;;  %v3176_v38 = vsel %vm813_vm5, %v812_v56, 0  ;;  %v3180_v53 = vadd.f32 %v2716_v25, %v2742_v54  ;;  %v573_v22 = vand.u32 2147483647, %v572_v14  ;;  %v2331_v52 = vmin.u32 %v1074_v17, %v3142_v40 }
 0x167   : > { %v1166_v33 = vmul.u32 %v3107_v57, %v1150_v48  ;;  %v1435_v46 = vsub.s32 32, %v1434_v45  ;;  %v1170_v18 = vsel %vm1168_vm0, %v1169_v31, %v3123_v44  ;;  %v1427_v61 = vand.u32 8388607, %v4525_v13 }
 0x168   : > { %4630 = vst [vmem:[#allocation11_spill] sm:$0xff] %v3180_v53  ;;  %v3187_v50 = vshrl.u32 %v1432_v63, 5  ;;  %v3191_v56 = vadd.f32 %v2716_v25, %v2766_v16  ;;  %v1437_v54 = vshll.u32 %v4528_v0, %v1434_v45  ;;  %v1440_v39 = vshll.u32 %v4526_v4, %v1434_v45  ;;  %v3203_v25 = vpop.eup %2561 }
 0x169   : > { %v1438_v2 = vshrl.u32 %v4526_v4, %v1435_v46  ;;  %v1441_v57 = vshrl.u32 %v4619_v23, %v1435_v46  ;;  %v1443_v44 = vshll.u32 %v4619_v23, %v1434_v45  ;;  %v1444_v8 = vshrl.u32 %v4620_v37, %v1435_v46  ;;  %4632 = vst [vmem:[#allocation13_spill] sm:$0xff] %v3203_v25 }
 0x16a   : > { %v1446_v51 = vshll.u32 %v4620_v37, %v1434_v45  ;;  %v1447_v3 = vshrl.u32 %v4540_v10, %v1435_v46  ;;  %2567 = vcosq.f32 %v787_v34  ;;  %v3205_v16 = vadd.s32 %v1170_v18, %v1166_v33 }
 0x16b   : > { %v1439_v12 = vor.u32 %v1438_v2, %v1437_v54  ;;  %v1442_v6 = vor.u32 %v1441_v57, %v1440_v39  ;;  %v3207_v60 = vpop.eup %2563  ;;  %v575_v14 = vcvt.s32.f32 %v568_v20  ;;  %v1428_v17 = vor.u32 8388608, %v1427_v61 }
 0x16c   : > { %4633 = vst [vmem:[#allocation14_spill] sm:$0xff] %v3207_v60  ;;  %v1445_v48 = vor.u32 %v1444_v8, %v1443_v44  ;;  %v1448_v31 = vor.u32 %v1447_v3, %v1446_v51  ;;  %2569 = vsinq.f32 %v787_v34  ;;  %v1449_v63 = vshll.u32 %v4540_v10, %v1434_v45 }
 0x16d   : > { %v1450_v13 = vshrl.u32 %v4532_v19, %v1435_v46  ;;  %v1217_v4 = vand.u32 2139095040, %v3191_v56  ;;  %v576_v0 = vmul.f32 %v575_v14, %v573_v22  ;;  %v1076_v62 = vclz %v2331_v52 }
 0x16e   : > { %v3213_v33 = vand.u32 31, %v3176_v38  ;;  %vm1452_vm1 = vcmp.lt.s32.totalorder %v3187_v50, 1  ;;  %v3216_v18 = vpop.eup %2565  ;;  %vm495_vm2 = vcmp.lt.s32.totalorder %v2745_v58, 0  ;;  %v1172_v20 = vadd.s32 536870912, %v3205_v16 }
 0x16f   : > { %4635 = vst [vmem:[#allocation16_spill] sm:$0xff] %v3216_v18  ;;  %v1451_v34 = vor.u32 %v1450_v13, %v1449_v63  ;;  %vm1455_vm3 = vcmp.lt.s32.totalorder %v3187_v50, 4  ;;  %v1460_v45 = vsel %vm1452_vm1, %v1439_v12, %v1442_v6  ;;  %vm1454_vm4 = vcmp.lt.s32.totalorder %v3187_v50, 3 }
 0x170   : > { %4634 = vst [vmem:[#allocation15_spill] sm:$0xff] %v3213_v33  ;;  %v1461_v22 = vsel %vm1455_vm3, %v1448_v31, 920167782  ;;  %v1464_v52 = vsel %vm1452_vm1, %v1442_v6, %v1445_v48  ;;  %v3228_v61 = vshll.u32 %v1428_v17, 8  ;;  %vm1453_vm7 = vcmp.lt.s32.totalorder %v3187_v50, 2 }
 0x171   : > { %v1462_v13 = vsel %vm1454_vm4, %v1445_v48, %v1461_v22  ;;  %v1465_v54 = vsel %vm1455_vm3, %v1451_v34, 1326507024  ;;  %v1218_v2 = vshrl.u32 %v1217_v4, 23  ;;  %v2332_v39 = vadd.s32 4294967294, %v1076_v62 }
 0x172   : > { %v908_v57 = vand.u32 2139095040, %v3180_v53  ;;  %v1463_v44 = vsel %vm1453_vm7, %v1460_v45, %v1462_v13  ;;  %v1466_v8 = vsel %vm1454_vm4, %v1448_v31, %v1465_v54  ;;  %v4636_v51 = vand.u32 2147483647, %v2745_v58 }
 0x173   : > { %v4637_v3 = vmov 0  ;;  %v3247_v14 = vsub.s32 32, %v3213_v33  ;;  %v1467_v4 = vsel %vm1453_vm7, %v1464_v52, %v1466_v8  ;;  %v577_v63 = vxor.u32 2147483648, %v576_v0 }
 0x174   : > { %vm3242_vm9 = vcmp.le.f32.partialorder %v4636_v51, 0.7853982  ;;  %v3252_v62 = vmul.u32.u64.low %v3228_v61, %v1463_v44  ;;  %v3253_v17 = vmul.u32.u64.high %v3228_v61, %v1463_v44, %v3252_v62  ;;  %v3256_v34 = vshrl.u32 %v1172_v20, 30  ;;  %v3260_v22 = vpop.eup %2567 }
 0x175   : > { %v4638_v3 = vsel %vm3242_vm9, 4294967295, %v4637_v3  ;;  %4640 = vst [vmem:[#allocation18_spill] sm:$0xff] %v3247_v14  ;;  %v1457_v31 = vsel %vm1455_vm3, %v1445_v48, 2102212464  ;;  %v2338_v45 = vadd.s32 4294967169, %v1218_v2  ;;  %4642 = vst [vmem:[#allocation20_spill] sm:$0xff] %v3260_v22  ;;  %v828_v44 = vshll.u32 %v4620_v37, %v3213_v33 }
 0x176   : > { %4639 = vst [vmem:[#allocation17_spill] sm:$0xff] %v4638_v3  ;;  %4641 = vst [vmem:[#allocation19_spill] sm:$0xff] %v3256_v34  ;;  %v4643_v13 = vmov 683565275   ;;  %v3264_v51 = vmul.u32.u64.low %v3228_v61, %v1467_v4  ;;  %v3265_v19 = vmul.u32.u64.high %v3228_v61, %v1467_v4, %v3264_v51  ;;  %vm2333_vm10 = vcmp.lt.s32.totalorder %v2332_v39, 0  ;;  %v3274_v2 = vpop.eup %2569 }
 0x177   : > { %v1436_v54 = vshrl.u32 %v4643_v13, %v1435_v46  ;;  %v3272_v20 = vshll.u32 %v4540_v10, %v3213_v33  ;;  %v1224_v48 = vadd.s32 1, %v2338_v45  ;;  %4644 = vst [vmem:[#allocation21_spill] sm:$0xff] %v3274_v2  ;;  %v829_v46 = vshrl.u32 %v4540_v10, %v3247_v14 }
 0x178   : > { %v4645_v8 = vmov 1326507024   ;;  %v1458_v52 = vsel %vm1454_vm4, %v1442_v6, %v1457_v31  ;;  %v578_v53 = vsel %vm495_vm2, %v577_v63, %v576_v0  ;;  %v1174_v45 = vshll.u32 %v3256_v34, 30 }
 0x179   : > { %v3280_v4 = vshrl.u32 %v4645_v8, %v3247_v14  ;;  %v1456_v51 = vsel %vm1452_vm1, %v1436_v54, %v1439_v12  ;;  %v909_v33 = vshrl.u32 %v908_v57, 23  ;;  %vm1225_vm6 = vcmp.gt.s32.totalorder %v1224_v48, 0  ;;  %v3296_v12 = vld [vmem:[%s4512_s2] ss:$0 sm:$0xff] }
 0x17a   : > { %v3289_v43 = vsel %vm2333_vm10, 0, %v2332_v39  ;;  %v4646_v10 = vand.u32 2147483647, %v3191_v56  ;;  %v1226_v14 = vsel %vm1225_vm6, %v1224_v48, 0  ;;  %v3300_v6 = vadd.f32 %v3296_v12, %v2775_v41 }
 0x17b   : > { %v3304_v0 = vadd.s32 %v2994_v32, %v3002_v7  ;;  %v3307_v39 = vshrl.u32 %v3176_v38, 5  ;;  %v1478_v57 = vadd.s32 1, %v3253_v17  ;;  %v3312_v63 = vor.u32 %v829_v46, %v828_v44 }
 0x17c   : > { %v1221_v22 = vand.u32 8388607, %v4646_v10  ;;  %4647 = vst [vmem:[#allocation22_spill] sm:$0xff] %v3300_v6  ;;  %v1459_v10 = vsel %vm1453_vm7, %v1456_v51, %v1458_v52  ;;  %v833_v31 = vor.u32 %v3280_v4, %v3272_v20  ;;  %vm1477_vm12 = vc.u32 %v3265_v19, %v3252_v62 }
 0x17d   : > { %4648 = vst [vmem:[#allocation23_spill] sm:$0xff] %v3307_v39  ;;  %4649 = vst [vmem:[#allocation24_spill] sm:$0xff] %v3312_v63  ;;  %v1228_v41 = vand.u32 31, %v1226_v14  ;;  %v3321_v32 = vsel %vm3242_vm9, %v2745_v58, %v578_v53  ;;  %v1084_v7 = vsub.s32 4294967266, %v3289_v43  ;;  %v3325_v38 = vsub.s32 %v3205_v16, %v1174_v45 }
 0x17e   : > { %v2326_v50 = vadd.s32 4294967169, %v909_v33  ;;  %v1475_v54 = vmul.u32 %v3228_v61, %v1459_v10  ;;  %v1222_v52 = vor.u32 8388608, %v1221_v22  ;;  %v1526_v20 = vand.u32 2139095040, %v3300_v6 }
 0x17f   : > { %v1229_v44 = vsub.s32 32, %v1228_v41  ;;  %v1479_v48 = vsel %vm1477_vm12, %v1478_v57, %v3253_v17  ;;  %v1227_v46 = vshrl.u32 %v1226_v14, 5  ;;  %v1231_v4 = vshll.u32 %v4643_v13, %v1228_v41 }
 0x180   : > { %v4650_v51 = vmov 2475754826   ;;  %v1237_v16 = vshll.u32 %v4619_v23, %v1228_v41  ;;  %v1240_v33 = vshll.u32 %v4620_v37, %v1228_v41  ;;  %vm837_vm13 = vcmp.lt.s32.totalorder %v3307_v39, 4 }
 0x181   : > { %v1234_v53 = vshll.u32 %v4650_v51, %v1228_v41  ;;  %v1232_v34 = vshrl.u32 %v4650_v51, %v1229_v44  ;;  %v1235_v9 = vshrl.u32 %v4619_v23, %v1229_v44  ;;  %v1238_v61 = vshrl.u32 %v4620_v37, %v1229_v44 }
 0x182   : > { %v4651_v22 = vmov 920167782   ;;  %v1244_v17 = vshrl.u32 %v4645_v8, %v1229_v44  ;;  %v3341_v10 = vadd.s32 %v1479_v48, %v1475_v54  ;;  %v1527_v36 = vshrl.u32 %v1526_v20, 23 }
 0x183   : > { %v1241_v45 = vshrl.u32 %v4651_v22, %v1229_v44  ;;  %v1243_v14 = vshll.u32 %v4651_v22, %v1228_v41  ;;  %v1233_v57 = vor.u32 %v1232_v34, %v1231_v4  ;;  %v1236_v2 = vor.u32 %v1235_v9, %v1234_v53 }
 0x184   : > { %v1239_v47 = vor.u32 %v1238_v61, %v1237_v16  ;;  %vm1246_vm14 = vcmp.lt.s32.totalorder %v1227_v46, 1  ;;  %v1177_v3 = vsub.s32 0, %v3325_v38  ;;  %vm1249_vm5 = vcmp.lt.s32.totalorder %v1227_v46, 4 }
 0x185   : > { %v1242_v27 = vor.u32 %v1241_v45, %v1240_v33  ;;  %v1245_v26 = vor.u32 %v1244_v17, %v1243_v14  ;;  %v1254_v25 = vsel %vm1246_vm14, %v1233_v57, %v1236_v2  ;;  %v1262_v58 = vshll.u32 %v1222_v52, 8 }
 0x186   : > { %v1230_v59 = vshrl.u32 %v4643_v13, %v1229_v44  ;;  %vm1248_vm15 = vcmp.lt.s32.totalorder %v1227_v46, 3  ;;  %v1251_v41 = vsel %vm1249_vm5, %v1239_v47, 2102212464  ;;  %v1481_v54 = vadd.s32 536870912, %v3341_v10 }
 0x187   : > { %v1255_v60 = vsel %vm1249_vm5, %v1242_v27, 920167782  ;;  %vm1247_vm0 = vcmp.lt.s32.totalorder %v1227_v46, 2  ;;  %v1258_v9 = vsel %vm1246_vm14, %v1236_v2, %v1239_v47  ;;  %v1259_v4 = vsel %vm1249_vm5, %v1245_v26, 1326507024 }
 0x188   : > { %v1256_v34 = vsel %vm1248_vm15, %v1239_v47, %v1255_v60  ;;  %v1250_v20 = vsel %vm1246_vm14, %v1230_v59, %v1233_v57  ;;  %v2350_v53 = vadd.s32 4294967169, %v1527_v36  ;;  %v1252_v16 = vsel %vm1248_vm15, %v1236_v2, %v1251_v41 }
 0x189   : > { %v1257_v48 = vsel %vm1247_vm0, %v1254_v25, %v1256_v34  ;;  %v1260_v33 = vsel %vm1248_vm15, %v1242_v27, %v1259_v4  ;;  %v2335_v52 = vmin.u32 %v1177_v3, %v3325_v38  ;;  %v915_v44 = vadd.s32 1, %v2326_v50 }
 0x18a   : > { %v3347_v61 = vmul.u32.u64.low %v1262_v58, %v1257_v48  ;;  %v3348_v45 = vmul.u32.u64.high %v1262_v58, %v1257_v48, %v3347_v61  ;;  %v1261_v14 = vsel %vm1247_vm0, %v1258_v9, %v1260_v33  ;;  %v1533_v17 = vadd.s32 1, %v2350_v53 }
 0x18b   : > { %v3356_v59 = vsel %vm837_vm13, %v3312_v63, 920167782  ;;  %v3358_v47 = vshrl.u32 %v1481_v54, 30  ;;  %v3360_v36 = vmul.u32.u64.low %v1262_v58, %v1261_v14  ;;  %v3361_v26 = vmul.u32.u64.high %v1262_v58, %v1261_v14, %v3360_v36 }
 0x18c   : > { %4652 = vst [vmem:[#allocation25_spill] sm:$0xff] %v3356_v59  ;;  %2571 = vcosq.f32 %v3321_v32  ;;  %v3366_v27 = vsel %vm837_vm13, %v833_v31, 1326507024  ;;  %v1253_v25 = vsel %vm1247_vm0, %v1250_v20, %v1252_v16  ;;  %vm1534_vm1 = vcmp.gt.s32.totalorder %v1533_v17, 0 }
 0x18d   : > { %4653 = vst [vmem:[#allocation26_spill] sm:$0xff] %v3358_v47  ;;  %4654 = vst [vmem:[#allocation27_spill] sm:$0xff] %v3366_v27  ;;  %v1080_v60 = vsub.s32 32, %v3289_v43  ;;  %v1085_v3 = vadd.s32 127, %v1084_v7  ;;  %v1272_v2 = vadd.s32 1, %v3348_v45  ;;  %v1535_v50 = vsel %vm1534_vm1, %v1533_v17, 0 }
 0x18e   : > { %v1179_v57 = vclz %v2335_v52  ;;  %vm916_vm3 = vcmp.gt.s32.totalorder %v915_v44, 0  ;;  %v4562_v41 = vand.u32 2147483647, %v3300_v6  ;;  %v1537_v54 = vand.u32 31, %v1535_v50 }
 0x18f   : > { %v1081_v34 = vshll.u32 %v3142_v40, %v3289_v43  ;;  %v1483_v31 = vshll.u32 %v3358_v47, 30  ;;  %v1269_v9 = vmul.u32 %v1262_v58, %v1253_v25  ;;  %vm1271_vm4 = vc.u32 %v3361_v26, %v3347_v61  ;;  %v2551_v43 = vld [vmem:[%s4513_s3] sm:$0xff]  }
 0x190   : > { %v3379_v7 = vadd.s32 %v3122_v28, %v3131_v42  ;;  %v1273_v46 = vsel %vm1271_vm4, %v1272_v2, %v3348_v45  ;;  %v1538_v20 = vsub.s32 32, %v1537_v54  ;;  %v3384_v48 = vadd.f32 %v3296_v12, %v2846_v24  ;;  %2424 = vmatprep.subr.bf16.mxu0 %v2551_v43  ;;  %2456 = vmatprep.subr.bf16.mxu1 %v2551_v43 }
 0x191   : > { %v1082_v58 = vshrl.u32 %v3304_v0, %v1080_v60  ;;  %v1086_v40 = vshll.u32 %v1085_v3, 23  ;;  %v3390_v4 = vsel %vm916_vm3, %v915_v44, 0  ;;  %v3392_v53 = vadd.s32 %v1273_v46, %v1269_v9  ;;  %2425 = vmatpush3.bf16.msra.mxu0 %v2551_v43  ;;  %2464 = vmatpush3.bf16.msra.mxu1 %v2551_v43 }
 0x192   : > { %4655 = vst [vmem:[#allocation28_spill] sm:$0xff] %v3384_v48  ;;  %v2336_v28 = vadd.s32 4294967294, %v1179_v57  ;;  %v1530_v42 = vand.u32 8388607, %v4562_v41  ;;  %v1541_v16 = vshrl.u32 %v4650_v51, %v1538_v20  ;;  %v1544_v24 = vshrl.u32 %v4619_v23, %v1538_v20 }
 0x193   : > { %v3399_v33 = vsub.s32 %v3341_v10, %v1483_v31  ;;  %v1275_v45 = vadd.s32 536870912, %v3392_v53  ;;  %v1540_v0 = vshll.u32 %v4643_v13, %v1537_v54  ;;  %v1543_v52 = vshll.u32 %v4650_v51, %v1537_v54  ;;  %v2552_v10 = vld [vmem:[%s4513_s3 + $0x8] sm:$0xff]  }
 0x194   : > { %v3404_v44 = vshrl.u32 %v1535_v50, 5  ;;  %v1546_v14 = vshll.u32 %v4619_v23, %v1537_v54  ;;  %v1547_v17 = vshrl.u32 %v4620_v37, %v1538_v20  ;;  %v1320_v36 = vand.u32 2139095040, %v3384_v48  ;;  %2426 = vmatprep.subr.bf16.mxu0 %v2552_v10  ;;  %2457 = vmatprep.subr.bf16.mxu1 %v2552_v10 }
 0x195   : > { %v1542_v25 = vor.u32 %v1541_v16, %v1540_v0  ;;  %v1545_v60 = vor.u32 %v1544_v24, %v1543_v52  ;;  %v1549_v3 = vshll.u32 %v4620_v37, %v1537_v54  ;;  %v1550_v2 = vshrl.u32 %v4651_v22, %v1538_v20  ;;  %2427 = vmatpush3.bf16.msra.mxu0 %v2552_v10 }
 0x196   : > { %v3414_v57 = vpop.eup %2571  ;;  %v3417_v50 = vand.u32 31, %v3390_v4  ;;  %v1548_v31 = vor.u32 %v1547_v17, %v1546_v14  ;;  %v1552_v9 = vshll.u32 %v4651_v22, %v1537_v54  ;;  %v1553_v46 = vshrl.u32 %v4645_v8, %v1538_v20  ;;  %v2553_v54 = vld [vmem:[%s4513_s3 + $0x10] sm:$0xff]   ;;  %2465 = vmatpush3.bf16.msra.mxu1 %v2552_v10 }
 0x197   : > { %4656 = vst [vmem:[#allocation29_spill] sm:$0xff] %v3414_v57  ;;  %v3421_v41 = vor.u32 %v1082_v58, %v1081_v34  ;;  %v3423_v43 = vor.u32 4788187, %v1086_v40  ;;  %v3425_v16 = vshrl.u32 %v1275_v45, 30  ;;  %v1551_v24 = vor.u32 %v1550_v2, %v1549_v3  ;;  %2428 = vmatprep.subr.bf16.mxu0 %v2553_v54  ;;  %2458 = vmatprep.subr.bf16.mxu1 %v2553_v54 }
 0x198   : > { %4657 = vst [vmem:[#allocation30_spill] sm:$0xff] %v3417_v50  ;;  %vm2337_vm7 = vcmp.lt.s32.totalorder %v2336_v28, 0  ;;  %v1531_v0 = vor.u32 8388608, %v1530_v42  ;;  %v1554_v52 = vor.u32 %v1553_v46, %v1552_v9  ;;  %v1321_v47 = vshrl.u32 %v1320_v36, 23  ;;  %v2554_v9 = vld [vmem:[%s4513_s3 + $0x18] sm:$0xff]  }
 0x199   : > { %4658 = vst [vmem:[#allocation31_spill] sm:$0xff] %v3425_v16  ;;  %v1486_v14 = vsub.s32 0, %v3399_v33  ;;  %v1539_v34 = vshrl.u32 %v4643_v13, %v1538_v20  ;;  %vm1555_vm10 = vcmp.lt.s32.totalorder %v3404_v44, 1  ;;  %vm1558_vm6 = vcmp.lt.s32.totalorder %v3404_v44, 4  ;;  %2429 = vmatpush3.bf16.msra.mxu0 %v2553_v54 }
 0x19a   : > { %vm1557_vm12 = vcmp.lt.s32.totalorder %v3404_v44, 3  ;;  %v1560_v58 = vsel %vm1558_vm6, %v1548_v31, 2102212464  ;;  %v1563_v40 = vsel %vm1555_vm10, %v1542_v25, %v1545_v60  ;;  %v1564_v42 = vsel %vm1558_vm6, %v1551_v24, 920167782  ;;  %2466 = vmatpush3.bf16.msra.mxu1 %v2553_v54  ;;  %2430 = vmatprep.subr.bf16.mxu0 %v2554_v9 }
 0x19b   : > { %v1277_v45 = vshll.u32 %v3425_v16, 30  ;;  %vm1556_vm14 = vcmp.lt.s32.totalorder %v3404_v44, 2  ;;  %v1565_v20 = vsel %vm1557_vm12, %v1548_v31, %v1564_v42  ;;  %v1567_v17 = vsel %vm1555_vm10, %v1545_v60, %v1548_v31  ;;  %2459 = vmatprep.subr.bf16.mxu1 %v2554_v9 }
 0x19c   : > { %v1566_v36 = vsel %vm1556_vm14, %v1563_v40, %v1565_v20  ;;  %v1568_v10 = vsel %vm1558_vm6, %v1554_v52, 1326507024  ;;  %v1571_v3 = vshll.u32 %v1531_v0, 8  ;;  %v2342_v2 = vadd.s32 4294967169, %v1321_v47 }
 0x19d   : > { %v3449_v46 = vsel %vm2337_vm7, 0, %v2336_v28  ;;  %v1559_v42 = vsel %vm1555_vm10, %v1539_v34, %v1542_v25  ;;  %v1561_v31 = vsel %vm1557_vm12, %v1545_v60, %v1560_v58  ;;  %v1569_v40 = vsel %vm1557_vm12, %v1551_v24, %v1568_v10  ;;  %2431 = vmatpush3.bf16.msra.mxu0 %v2554_v9 }
 0x19e   : > { %v1570_v47 = vsel %vm1556_vm14, %v1567_v17, %v1569_v40  ;;  %v3459_v0 = vmul.u32.u64.low %v1571_v3, %v1566_v36  ;;  %v3460_v52 = vmul.u32.u64.high %v1571_v3, %v1566_v36, %v3459_v0  ;;  %v1327_v54 = vadd.s32 1, %v2342_v2  ;;  %2467 = vmatpush3.bf16.msra.mxu1 %v2554_v9 }
 0x19f   : > { %v2347_v28 = vmin.u32 %v1486_v14, %v3399_v33  ;;  %v3465_v25 = vsub.s32 %v3392_v53, %v1277_v45  ;;  %v3467_v34 = vmul.u32.u64.low %v1571_v3, %v1570_v47  ;;  %v3468_v60 = vmul.u32.u64.high %v1571_v3, %v1570_v47, %v3467_v34  ;;  %v2555_v14 = vld [vmem:[%s4513_s3 + $0x20] sm:$0xff]  }
 0x1a0   : > { %v3471_v24 = vshrl.u32 %v3390_v4, 5  ;;  %v3474_v58 = vsub.s32 32, %v3417_v50  ;;  %v1562_v20 = vsel %vm1556_vm14, %v1559_v42, %v1561_v31  ;;  %vm1328_vm5 = vcmp.gt.s32.totalorder %v1327_v54, 0  ;;  %2432 = vmatprep.subr.bf16.mxu0 %v2555_v14  ;;  %2460 = vmatprep.subr.bf16.mxu1 %v2555_v14 }
 0x1a1   : > { %v1088_v53 = vand.u32 2147483647, %v3423_v43  ;;  %v1090_v45 = vcvt.s32.f32 %v3421_v41  ;;  %v3485_v4 = vshll.u32 %v4620_v37, %v3417_v50  ;;  %v1329_v17 = vsel %vm1328_vm5, %v1327_v54, 0  ;;  %2433 = vmatpush3.bf16.msra.mxu0 %v2555_v14 }
 0x1a2   : > { %4659 = vst [vmem:[#allocation32_spill] sm:$0xff] %v3474_v58  ;;  %v1187_v36 = vsub.s32 4294967266, %v3449_v46  ;;  %v1581_v44 = vadd.s32 1, %v3460_v52  ;;  %v1331_v2 = vand.u32 31, %v1329_v17  ;;  %v1488_v42 = vclz %v2347_v28  ;;  %2468 = vmatpush3.bf16.msra.mxu1 %v2555_v14 }
 0x1a3   : > { %v1280_v9 = vsub.s32 0, %v3465_v25  ;;  %v1578_v43 = vmul.u32 %v1571_v3, %v1562_v20  ;;  %vm1580_vm15 = vc.u32 %v3468_v60, %v3459_v0  ;;  %v3495_v41 = vshrl.u32 %v4651_v22, %v3474_v58  ;;  %v2556_v3 = vld [vmem:[%s4513_s3 + $0x28] sm:$0xff]  }
 0x1a4   : > { %v3499_v31 = vshll.u32 %v4651_v22, %v3417_v50  ;;  %v1582_v40 = vsel %vm1580_vm15, %v1581_v44, %v3460_v52  ;;  %v3502_v47 = vsub.s32 32, %v1331_v2  ;;  %v3507_v54 = vmul.f32 %v1090_v45, %v1088_v53  ;;  %2434 = vmatprep.subr.bf16.mxu0 %v2556_v3  ;;  %2461 = vmatprep.subr.bf16.mxu1 %v2556_v3 }
 0x1a5   : > { %v1183_v28 = vsub.s32 32, %v3449_v46  ;;  %v3512_v34 = vshrl.u32 %v4645_v8, %v3474_v58  ;;  %v1583_v20 = vadd.s32 %v1582_v40, %v1578_v43  ;;  %v3514_v10 = vadd.s32 127, %v1187_v36  ;;  %2435 = vmatpush3.bf16.msra.mxu0 %v2556_v3 }
 0x1a6   : > { %v4660_v52 = vand.u32 2147483647, %v3384_v48  ;;  %v1335_v16 = vshrl.u32 %v4650_v51, %v3502_v47  ;;  %v1338_v14 = vshrl.u32 %v4619_v23, %v3502_v47  ;;  %v2348_v53 = vadd.s32 4294967294, %v1488_v42  ;;  %v2557_v42 = vld [vmem:[%s4513_s3 + $0x30] sm:$0xff]   ;;  %2469 = vmatpush3.bf16.msra.mxu1 %v2556_v3 }
 0x1a7   : > { %v2339_v45 = vmin.u32 %v1280_v9, %v3465_v25  ;;  %v1584_v6 = vadd.s32 536870912, %v1583_v20  ;;  %v1334_v58 = vshll.u32 %v4643_v13, %v1331_v2  ;;  %v3524_v36 = vshrl.u32 %v1329_v17, 5  ;;  %2436 = vmatprep.subr.bf16.mxu0 %v2557_v42  ;;  %2462 = vmatprep.subr.bf16.mxu1 %v2557_v42 }
 0x1a8   : > { %v1324_v44 = vand.u32 8388607, %v4660_v52  ;;  %v1337_v43 = vshll.u32 %v4650_v51, %v1331_v2  ;;  %v1340_v40 = vshll.u32 %v4619_v23, %v1331_v2  ;;  %v1341_v52 = vshrl.u32 %v4620_v37, %v3502_v47 }
 0x1a9   : > { %v3533_v9 = vshrl.u32 %v1584_v6, 30  ;;  %v1336_v48 = vor.u32 %v1335_v16, %v1334_v58  ;;  %v1343_v50 = vshll.u32 %v4620_v37, %v1331_v2  ;;  %v1344_v17 = vshrl.u32 %v4651_v22, %v3502_v47  ;;  %2437 = vmatpush3.bf16.msra.mxu0 %v2557_v42 }
 0x1aa   : > { %v1325_v59 = vor.u32 8388608, %v1324_v44  ;;  %v1339_v63 = vor.u32 %v1338_v14, %v1337_v43  ;;  %v1346_v27 = vshll.u32 %v4651_v22, %v1331_v2  ;;  %v1347_v39 = vshrl.u32 %v4645_v8, %v3502_v47  ;;  %v2558_v14 = vld [vmem:[%s4513_s3 + $0x38] sm:$0xff]   ;;  %2470 = vmatpush3.bf16.msra.mxu1 %v2557_v42 }
 0x1ab   : > { %4661 = vst [vmem:[#allocation33_spill] sm:$0xff] %v3533_v9  ;;  %v1184_v3 = vshll.u32 %v3325_v38, %v3449_v46  ;;  %v1282_v6 = vclz %v2339_v45  ;;  %v1342_v57 = vor.u32 %v1341_v52, %v1340_v40  ;;  %v1345_v16 = vor.u32 %v1344_v17, %v1343_v50  ;;  %2438 = vmatprep.subr.bf16.mxu0 %v2558_v14 }
 0x1ac   : > { %v1185_v58 = vshrl.u32 %v3379_v7, %v1183_v28  ;;  %v1189_v18 = vshll.u32 %v3514_v10, 23  ;;  %v1348_v44 = vor.u32 %v1347_v39, %v1346_v27  ;;  %v3547_v2 = vadd.f32 %v3296_v12, %v2910_v30  ;;  %2463 = vmatprep.subr.bf16.mxu1 %v2558_v14 }
 0x1ad   : > { %vm2349_vm0 = vcmp.lt.s32.totalorder %v2348_v53, 0  ;;  %v1586_v38 = vshll.u32 %v3533_v9, 30  ;;  %vm1349_vm1 = vcmp.lt.s32.totalorder %v3524_v36, 1  ;;  %vm1352_vm3 = vcmp.lt.s32.totalorder %v3524_v36, 4  ;;  %2439 = vmatpush3.bf16.msra.mxu0 %v2558_v14 }
 0x1ae   : > { %4662 = vst [vmem:[#allocation34_spill] sm:$0xff] %v3547_v2  ;;  %vm1351_vm4 = vcmp.lt.s32.totalorder %v3524_v36, 3  ;;  %v1357_v39 = vsel %vm1349_vm1, %v1336_v48, %v1339_v63  ;;  %v1358_v27 = vsel %vm1352_vm3, %v1345_v16, 920167782  ;;  %v1365_v30 = vshll.u32 %v1325_v59, 8  ;;  %2471 = vmatpush3.bf16.msra.mxu1 %v2558_v14 }
 0x1af   : > { %vm1010_vm7 = vcmp.lt.s32.totalorder %v2917_v49, 0  ;;  %v2340_v7 = vadd.s32 4294967294, %v1282_v6  ;;  %vm1350_vm10 = vcmp.lt.s32.totalorder %v3524_v36, 2  ;;  %v1359_v50 = vsel %vm1351_vm4, %v1342_v57, %v1358_v27 }
 0x1b0   : > { %v1361_v46 = vsel %vm1349_vm1, %v1339_v63, %v1342_v57  ;;  %v1354_v10 = vsel %vm1352_vm3, %v1342_v57, 2102212464  ;;  %v1360_v28 = vsel %vm1350_vm10, %v1357_v39, %v1359_v50  ;;  %v1362_v45 = vsel %vm1352_vm3, %v1348_v44, 1326507024 }
 0x1b1   : > { %v1835_v59 = vand.u32 2139095040, %v3547_v2  ;;  %v1491_v43 = vsel %vm2349_vm0, 0, %v2348_v53  ;;  %v3568_v40 = vsub.s32 %v1583_v20, %v1586_v38  ;;  %v1333_v52 = vshrl.u32 %v4643_v13, %v3502_v47 }
 0x1b2   : > { %v1363_v42 = vsel %vm1351_vm4, %v1345_v16, %v1362_v45  ;;  %vm940_vm6 = vcmp.lt.s32.totalorder %v3471_v24, 4  ;;  %v3577_v17 = vmul.u32.u64.low %v1365_v30, %v1360_v28  ;;  %v3578_v6 = vmul.u32.u64.high %v1365_v30, %v1360_v28, %v3577_v17 }
 0x1b3   : > { %v1364_v57 = vsel %vm1350_vm10, %v1361_v46, %v1363_v42  ;;  %v1836_v44 = vshrl.u32 %v1835_v59, 23  ;;  %v4663_v53 = vand.u32 2147483647, %v2917_v49  ;;  %v4664_v20 = vmov 0 }
 0x1b4   : > { %v1353_v47 = vsel %vm1349_vm1, %v1333_v52, %v1336_v48  ;;  %v1355_v16 = vsel %vm1351_vm4, %v1339_v63, %v1354_v10  ;;  %v3591_v14 = vmul.u32.u64.low %v1365_v30, %v1364_v57  ;;  %v3592_v38 = vmul.u32.u64.high %v1365_v30, %v1364_v57, %v3591_v14 }
 0x1b5   : > { %vm3583_vm12 = vcmp.le.f32.partialorder %v4663_v53, 0.7853982  ;;  %v1092_v39 = vxor.u32 2147483648, %v3507_v54  ;;  %v1190_v27 = vor.u32 4788187, %v1189_v18  ;;  %vm2341_vm14 = vcmp.lt.s32.totalorder %v2340_v7, 0 }
 0x1b6   : > { %v4665_v20 = vsel %vm3583_vm12, 4294967295, %v4664_v20  ;;  %v2362_v50 = vadd.s32 4294967169, %v1836_v44  ;;  %v1186_v46 = vor.u32 %v1185_v58, %v1184_v3  ;;  %v3597_v28 = vor.u32 %v3495_v41, %v3485_v4 }
 0x1b7   : > { %4666 = vst [vmem:[#allocation35_spill] sm:$0xff] %v4665_v20  ;;  %v1492_v45 = vsub.s32 32, %v1491_v43  ;;  %v1496_v59 = vsub.s32 4294967266, %v1491_v43  ;;  %v1589_v48 = vsub.s32 0, %v3568_v40  ;;  %v1356_v63 = vsel %vm1350_vm10, %v1353_v47, %v1355_v16 }
 0x1b8   : > { %v1375_v10 = vadd.s32 1, %v3578_v6  ;;  %v1842_v52 = vadd.s32 1, %v2362_v50  ;;  %v936_v18 = vor.u32 %v3512_v34, %v3499_v31  ;;  %v1476_v3 = vadd.s32 %v3252_v62, %v3265_v19 }
 0x1b9   : > { %v3607_v58 = vsel %vm2341_vm14, 0, %v2340_v7  ;;  %vm1374_vm5 = vc.u32 %v3592_v38, %v3577_v17  ;;  %v1093_v4 = vsel %vm1010_vm7, %v1092_v39, %v3507_v54  ;;  %v1191_v41 = vand.u32 2147483647, %v1190_v27 }
 0x1ba   : > { %v1376_v36 = vsel %vm1374_vm5, %v1375_v10, %v3578_v6  ;;  %vm1843_vm15 = vcmp.gt.s32.totalorder %v1842_v52, 0  ;;  %v1193_v42 = vcvt.s32.f32 %v1186_v46  ;;  %v1494_v57 = vshrl.u32 %v1476_v3, %v1492_v45 }
 0x1bb   : > { %v1497_v44 = vadd.s32 127, %v1496_v59  ;;  %v1372_v31 = vmul.u32 %v1365_v30, %v1356_v63  ;;  %v1290_v34 = vsub.s32 4294967266, %v3607_v58  ;;  %v2351_v19 = vmin.u32 %v1589_v48, %v3568_v40 }
 0x1bc   : > { %v4580_v62 = vand.u32 2147483647, %v3547_v2  ;;  %v1844_v7 = vsel %vm1843_vm15, %v1842_v52, 0  ;;  %2573 = vsinq.f32 %v3321_v32  ;;  %v3622_v54 = vsel %vm940_vm6, %v3597_v28, 920167782 }
 0x1bd   : > { %4667 = vst [vmem:[#allocation36_spill] sm:$0xff] %v3622_v54  ;;  %v1493_v6 = vshll.u32 %v3399_v33, %v1491_v43  ;;  %v1377_v53 = vadd.s32 %v1376_v36, %v1372_v31  ;;  %v3628_v30 = vsel %vm3583_vm12, %v2917_v49, %v1093_v4  ;;  %v3630_v47 = vmul.f32 %v1193_v42, %v1191_v41 }
 0x1be   : > { %v3634_v16 = vsel %vm940_vm6, %v936_v18, 1326507024  ;;  %v1846_v32 = vand.u32 31, %v1844_v7  ;;  %v1498_v39 = vshll.u32 %v1497_v44, 23  ;;  %v3640_v27 = vadd.s32 %v3347_v61, %v3361_v26 }
 0x1bf   : > { %v3636_v14 = vor.u32 %v1494_v57, %v1493_v6  ;;  %v3644_v33 = vadd.f32 %v3296_v12, %v2948_v21  ;;  %v1291_v43 = vadd.s32 127, %v1290_v34  ;;  %v1591_v50 = vclz %v2351_v19 }
 0x1c0   : > { %v1839_v46 = vand.u32 8388607, %v4580_v62  ;;  %v1847_v45 = vsub.s32 32, %v1846_v32  ;;  %v1378_v59 = vadd.s32 536870912, %v1377_v53  ;;  %v1845_v48 = vshrl.u32 %v1844_v7, 5 }
 0x1c1   : > { %4668 = vst [vmem:[#allocation37_spill] sm:$0xff] %v3644_v33  ;;  %v1849_v63 = vshll.u32 %v4643_v13, %v1846_v32  ;;  %v1852_v10 = vshll.u32 %v4650_v51, %v1846_v32  ;;  %v1855_v26 = vshll.u32 %v4619_v23, %v1846_v32  ;;  %v1858_v18 = vshll.u32 %v4620_v37, %v1846_v32 }
 0x1c2   : > { %v1850_v52 = vshrl.u32 %v4650_v51, %v1847_v45  ;;  %v1853_v61 = vshrl.u32 %v4619_v23, %v1847_v45  ;;  %v1856_v21 = vshrl.u32 %v4620_v37, %v1847_v45  ;;  %v1859_v3 = vshrl.u32 %v4651_v22, %v1847_v45 }
 0x1c3   : > { %v1861_v4 = vshll.u32 %v4651_v22, %v1846_v32  ;;  %v1629_v41 = vand.u32 2139095040, %v3644_v33  ;;  %v1862_v44 = vshrl.u32 %v4645_v8, %v1847_v45  ;;  %v1499_v31 = vor.u32 4788187, %v1498_v39 }
 0x1c4   : > { %v1851_v36 = vor.u32 %v1850_v52, %v1849_v63  ;;  %v1854_v42 = vor.u32 %v1853_v61, %v1852_v10  ;;  %v1857_v57 = vor.u32 %v1856_v21, %v1855_v26  ;;  %v1286_v34 = vsub.s32 32, %v3607_v58 }
 0x1c5   : > { %v3660_v19 = vshrl.u32 %v1378_v59, 30  ;;  %v1860_v7 = vor.u32 %v1859_v3, %v1858_v18  ;;  %v1292_v6 = vshll.u32 %v1291_v43, 23  ;;  %v1840_v62 = vor.u32 8388608, %v1839_v46 }
 0x1c6   : > { %v1863_v9 = vor.u32 %v1862_v44, %v1861_v4  ;;  %vm1864_vm0 = vcmp.lt.s32.totalorder %v1845_v48, 1  ;;  %v3662_v20 = vpop.eup %2573  ;;  %v2352_v32 = vadd.s32 4294967294, %v1591_v50  ;;  %vm1867_vm1 = vcmp.lt.s32.totalorder %v1845_v48, 4 }
 0x1c7   : > { %4669 = vst [vmem:[#allocation38_spill] sm:$0xff] %v3660_v19  ;;  %v1872_v63 = vsel %vm1864_vm0, %v1851_v36, %v1854_v42  ;;  %v1630_v10 = vshrl.u32 %v1629_v41, 23  ;;  %vm1866_vm3 = vcmp.lt.s32.totalorder %v1845_v48, 3  ;;  %v1873_v52 = vsel %vm1867_vm1, %v1860_v7, 920167782 }
 0x1c8   : > { %v1876_v39 = vsel %vm1864_vm0, %v1854_v42, %v1857_v57  ;;  %v1877_v61 = vsel %vm1867_vm1, %v1863_v9, 1326507024  ;;  %vm4597_vm4 = vcmp.lt.s32.totalorder %v2937_v35, 0  ;;  %v1380_v59 = vshll.u32 %v3660_v19, 30 }
 0x1c9   : > { %vm1865_vm10 = vcmp.lt.s32.totalorder %v1845_v48, 2  ;;  %v1869_v43 = vsel %vm1867_vm1, %v1857_v57, 2102212464  ;;  %v1874_v46 = vsel %vm1866_vm3, %v1857_v57, %v1873_v52  ;;  %v1848_v26 = vshrl.u32 %v4643_v13, %v1847_v45 }
 0x1ca   : > { %v1875_v50 = vsel %vm1865_vm10, %v1872_v63, %v1874_v46  ;;  %v1878_v21 = vsel %vm1866_vm3, %v1860_v7, %v1877_v61  ;;  %v1880_v18 = vshll.u32 %v1840_v62, 8  ;;  %v4584_v4 = vand.u32 2147483647, %v3644_v33 }
 0x1cb   : > { %v1879_v3 = vsel %vm1865_vm10, %v1876_v39, %v1878_v21  ;;  %v2354_v9 = vadd.s32 4294967169, %v1630_v10  ;;  %v3676_v41 = vadd.f32 %v3296_v12, %v3020_v11  ;;  %v1868_v44 = vsel %vm1864_vm0, %v1848_v26, %v1851_v36 }
 0x1cc   : > { %v1870_v57 = vsel %vm1866_vm3, %v1854_v42, %v1869_v43  ;;  %v3680_v52 = vmul.u32.u64.low %v1880_v18, %v1879_v3  ;;  %v3681_v45 = vmul.u32.u64.high %v1880_v18, %v1879_v3, %v3680_v52  ;;  %v3683_v63 = vsub.s32 %v1377_v53, %v1380_v59 }
 0x1cd   : > { %v3685_v7 = vmul.u32.u64.low %v1880_v18, %v1875_v50  ;;  %v3686_v62 = vmul.u32.u64.high %v1880_v18, %v1875_v50, %v3685_v7  ;;  %v1636_v39 = vadd.s32 1, %v2354_v9  ;;  %2575 = vcosq.f32 %v3628_v30 }
 0x1ce   : > { %v1195_v10 = vxor.u32 2147483648, %v3630_v47  ;;  %v1500_v11 = vand.u32 2147483647, %v1499_v31  ;;  %v1502_v61 = vcvt.s32.f32 %v3636_v14  ;;  %v1288_v36 = vshrl.u32 %v3640_v27, %v1286_v34 }
 0x1cf   : > { %v3693_v42 = vor.u32 4788187, %v1292_v6  ;;  %v1871_v43 = vsel %vm1865_vm10, %v1868_v44, %v1870_v57  ;;  %vm1637_vm14 = vcmp.gt.s32.totalorder %v1636_v39, 0  ;;  %v1287_v53 = vshll.u32 %v3465_v25, %v3607_v58 }
 0x1d0   : > { %vm1889_vm5 = vc.u32 %v3681_v45, %v3685_v7  ;;  %v1633_v59 = vand.u32 8388607, %v4584_v4  ;;  %v1638_v46 = vsel %vm1637_vm14, %v1636_v39, 0  ;;  %vm2353_vm15 = vcmp.lt.s32.totalorder %v2352_v32, 0 }
 0x1d1   : > { %v1383_v14 = vsub.s32 0, %v3683_v63  ;;  %v1890_v27 = vadd.s32 1, %v3686_v62  ;;  %v1938_v31 = vand.u32 2139095040, %v3676_v41  ;;  %v3708_v48 = vsel %vm4597_vm4, %v1195_v10, %v3630_v47 }
 0x1d2   : > { %v3710_v25 = vmul.f32 %v1502_v61, %v1500_v11  ;;  %v1887_v58 = vmul.u32 %v1880_v18, %v1871_v43  ;;  %v1640_v34 = vand.u32 31, %v1638_v46  ;;  %v3712_v6 = vor.u32 %v1288_v36, %v1287_v53 }
 0x1d3   : > { %v1294_v26 = vand.u32 2147483647, %v3693_v42  ;;  %v3717_v50 = vadd.s32 %v3459_v0, %v3468_v60  ;;  %v1891_v21 = vsel %vm1889_vm5, %v1890_v27, %v3686_v62  ;;  %v3720_v3 = vsel %vm2353_vm15, 0, %v2352_v32 }
 0x1d4   : > { %v1892_v9 = vadd.s32 %v1891_v21, %v1887_v58  ;;  %v1634_v44 = vor.u32 8388608, %v1633_v59  ;;  %v1641_v47 = vsub.s32 32, %v1640_v34  ;;  %v2343_v57 = vmin.u32 %v1383_v14, %v3683_v63 }
 0x1d5   : > { %v1639_v52 = vshrl.u32 %v1638_v46, 5  ;;  %v1643_v18 = vshll.u32 %v4643_v13, %v1640_v34  ;;  %v1939_v39 = vshrl.u32 %v1938_v31, 23  ;;  %v1646_v61 = vshll.u32 %v4650_v51, %v1640_v34 }
 0x1d6   : > { %v1893_v10 = vadd.s32 536870912, %v1892_v9  ;;  %v1644_v11 = vshrl.u32 %v4650_v51, %v1641_v47  ;;  %v1647_v0 = vshrl.u32 %v4619_v23, %v1641_v47  ;;  %v1649_v60 = vshll.u32 %v4619_v23, %v1640_v34 }
 0x1d7   : > { %v1650_v32 = vshrl.u32 %v4620_v37, %v1641_v47  ;;  %v1652_v62 = vshll.u32 %v4620_v37, %v1640_v34  ;;  %v1653_v36 = vshrl.u32 %v4651_v22, %v1641_v47  ;;  %v3731_v42 = vpop.eup %2575  ;;  %v1655_v59 = vshll.u32 %v4651_v22, %v1640_v34 }
 0x1d8   : > { %4670 = vst [vmem:[#allocation39_spill] sm:$0xff] %v3731_v42  ;;  %v1645_v43 = vor.u32 %v1644_v11, %v1643_v18  ;;  %v1648_v53 = vor.u32 %v1647_v0, %v1646_v61  ;;  %v1656_v46 = vshrl.u32 %v4645_v8, %v1641_v47  ;;  %v1599_v14 = vsub.s32 4294967266, %v3720_v3 }
 0x1d9   : > { %v3736_v27 = vshrl.u32 %v1893_v10, 30  ;;  %v1651_v31 = vor.u32 %v1650_v32, %v1649_v60  ;;  %v1654_v58 = vor.u32 %v1653_v36, %v1652_v62  ;;  %v1385_v21 = vclz %v2343_v57 }
 0x1da   : > { %v1657_v4 = vor.u32 %v1656_v46, %v1655_v59  ;;  %vm1658_vm0 = vcmp.lt.s32.totalorder %v1639_v52, 1  ;;  %vm1661_vm1 = vcmp.lt.s32.totalorder %v1639_v52, 4  ;;  %v1674_v42 = vshll.u32 %v1634_v44, 8 }
 0x1db   : > { %4671 = vst [vmem:[#allocation40_spill] sm:$0xff] %v3736_v27  ;;  %v1663_v19 = vsel %vm1661_vm1, %v1651_v31, 2102212464  ;;  %v1666_v49 = vsel %vm1658_vm0, %v1645_v43, %v1648_v53  ;;  %v2366_v18 = vadd.s32 4294967169, %v1939_v39  ;;  %v1642_v11 = vshrl.u32 %v4643_v13, %v1641_v47 }
 0x1dc   : > { %vm1660_vm3 = vcmp.lt.s32.totalorder %v1639_v52, 3  ;;  %v1667_v34 = vsel %vm1661_vm1, %v1654_v58, 920167782  ;;  %v1670_v61 = vsel %vm1658_vm0, %v1648_v53, %v1651_v31  ;;  %v4672_v10 = vand.u32 2147483647, %v2937_v35 }
 0x1dd   : > { %vm4596_vm14 = vcmp.lt.s32.totalorder %v3099_v5, 0  ;;  %v1895_v57 = vshll.u32 %v3736_v27, 30  ;;  %vm1659_vm5 = vcmp.lt.s32.totalorder %v1639_v52, 2  ;;  %v1668_v60 = vsel %vm1660_vm3, %v1651_v31, %v1667_v34 }
 0x1de   : > { %vm3743_vm10 = vcmp.le.f32.partialorder %v4672_v10, 0.7853982  ;;  %v1671_v44 = vsel %vm1661_vm1, %v1657_v4, 1326507024  ;;  %v1662_v39 = vsel %vm1658_vm0, %v1642_v11, %v1645_v43  ;;  %v1664_v47 = vsel %vm1660_vm3, %v1648_v53, %v1663_v19 }
 0x1df   : > { %v1669_v32 = vsel %vm1659_vm5, %v1666_v49, %v1668_v60  ;;  %v1672_v62 = vsel %vm1660_vm3, %v1654_v58, %v1671_v44  ;;  %v1595_v36 = vsub.s32 32, %v3720_v3  ;;  %v1296_v33 = vcvt.s32.f32 %v3712_v6 }
 0x1e0   : > { %v1673_v59 = vsel %vm1659_vm5, %v1670_v61, %v1672_v62  ;;  %v3751_v46 = vmul.u32.u64.low %v1674_v42, %v1669_v32  ;;  %v3752_v10 = vmul.u32.u64.high %v1674_v42, %v1669_v32, %v3751_v46  ;;  %v1600_v2 = vadd.s32 127, %v1599_v14 }
 0x1e1   : > { %v3756_v54 = vmul.u32.u64.low %v1674_v42, %v1673_v59  ;;  %v3757_v27 = vmul.u32.u64.high %v1674_v42, %v1673_v59, %v3756_v54  ;;  %v2344_v31 = vadd.s32 4294967294, %v1385_v21  ;;  %v3759_v4 = vsub.s32 %v1892_v9, %v1895_v57 }
 0x1e2   : > { %v1665_v52 = vsel %vm1659_vm5, %v1662_v39, %v1664_v47  ;;  %v1945_v19 = vadd.s32 1, %v2366_v18  ;;  %v1504_v49 = vxor.u32 2147483648, %v3710_v25  ;;  %v3762_v43 = vmul.f32 %v1296_v33, %v1294_v26 }
 0x1e3   : > { %v1596_v53 = vshll.u32 %v3568_v40, %v3720_v3  ;;  %v3768_v58 = vadd.f32 %v3296_v12, %v3133_v15  ;;  %v1597_v6 = vshrl.u32 %v3717_v50, %v1595_v36  ;;  %v1684_v54 = vadd.s32 1, %v3752_v10 }
 0x1e4   : > { %v4598_v9 = vand.u32 2147483647, %v3676_v41  ;;  %vm1946_vm15 = vcmp.gt.s32.totalorder %v1945_v19, 0  ;;  %v1601_v14 = vshll.u32 %v1600_v2, 23  ;;  %v1681_v21 = vmul.u32 %v1674_v42, %v1665_v52 }
 0x1e5   : > { %vm1683_vm0 = vc.u32 %v3757_v27, %v3751_v46  ;;  %v1947_v33 = vsel %vm1946_vm15, %v1945_v19, 0  ;;  %vm2345_vm1 = vcmp.lt.s32.totalorder %v2344_v31, 0  ;;  %v1898_v40 = vsub.s32 0, %v3759_v4 }
 0x1e6   : > { %v1685_v26 = vsel %vm1683_vm0, %v1684_v54, %v3752_v10  ;;  %v1949_v15 = vand.u32 31, %v1947_v33  ;;  %2577 = vsinq.f32 %v3628_v30  ;;  %v3782_v12 = vsel %vm3743_vm10, %v2937_v35, %v3708_v48 }
 0x1e7   : > { %v3787_v2 = vsel %vm4596_vm14, %v1504_v49, %v3710_v25  ;;  %v1686_v50 = vadd.s32 %v1685_v26, %v1681_v21  ;;  %v3790_v42 = vor.u32 %v1597_v6, %v1596_v53  ;;  %v1373_v18 = vadd.s32 %v3577_v17, %v3592_v38 }
 0x1e8   : > { %v1950_v30 = vsub.s32 32, %v1949_v15  ;;  %v3794_v11 = vor.u32 4788187, %v1601_v14  ;;  %v3796_v34 = vsel %vm2345_vm1, 0, %v2344_v31  ;;  %v1942_v61 = vand.u32 8388607, %v4598_v9 }
 0x1e9   : > { %v1687_v48 = vadd.s32 536870912, %v1686_v50  ;;  %v2363_v25 = vmin.u32 %v1898_v40, %v3759_v4  ;;  %v1732_v44 = vand.u32 2139095040, %v3768_v58  ;;  %v1952_v17 = vshll.u32 %v4643_v13, %v1949_v15 }
 0x1ea   : > { %v1953_v57 = vshrl.u32 %v4650_v51, %v1950_v30  ;;  %v1956_v60 = vshrl.u32 %v4619_v23, %v1950_v30  ;;  %v1955_v38 = vshll.u32 %v4650_v51, %v1949_v15  ;;  %v1959_v47 = vshrl.u32 %v4620_v37, %v1950_v30 }
 0x1eb   : > { %v3804_v39 = vshrl.u32 %v1687_v48, 30  ;;  %v1948_v32 = vshrl.u32 %v1947_v33, 5  ;;  %v1958_v62 = vshll.u32 %v4619_v23, %v1949_v15  ;;  %v1961_v36 = vshll.u32 %v4620_v37, %v1949_v15 }
 0x1ec   : > { %v1962_v59 = vshrl.u32 %v4651_v22, %v1950_v30  ;;  %v1603_v10 = vand.u32 2147483647, %v3794_v11  ;;  %v1954_v52 = vor.u32 %v1953_v57, %v1952_v17  ;;  %v1957_v19 = vor.u32 %v1956_v60, %v1955_v38 }
 0x1ed   : > { %4675 = vst [vmem:[#allocation41_spill] sm:$0xff] %v3804_v39  ;;  %v1689_v31 = vshll.u32 %v3804_v39, 30  ;;  %v1960_v49 = vor.u32 %v1959_v47, %v1958_v62  ;;  %v1964_v6 = vshll.u32 %v4651_v22, %v1949_v15  ;;  %v1965_v54 = vshrl.u32 %v4645_v8, %v1950_v30 }
 0x1ee   : > { %v1963_v53 = vor.u32 %v1962_v59, %v1961_v36  ;;  %v4676_v14 = vand.u32 2147483647, %v3099_v5  ;;  %v1389_v33 = vsub.s32 32, %v3796_v34  ;;  %v1393_v40 = vsub.s32 4294967266, %v3796_v34 }
 0x1ef   : > { %v1943_v26 = vor.u32 8388608, %v1942_v61  ;;  %v4599_v11 = vand.u32 2147483647, %v3768_v58  ;;  %v1900_v48 = vclz %v2363_v25  ;;  %v1966_v57 = vor.u32 %v1965_v54, %v1964_v6 }
 0x1f0   : > { %vm3818_vm3 = vcmp.le.f32.partialorder %v4676_v14, 0.7853982  ;;  %vm1967_vm5 = vcmp.lt.s32.totalorder %v1948_v32, 1  ;;  %v1733_v60 = vshrl.u32 %v1732_v44, 23  ;;  %v3825_v15 = vpop.eup %2577  ;;  %vm4605_vm15 = vcmp.lt.s32.totalorder %v3191_v56, 0 }
 0x1f1   : > { %v3828_v17 = vsub.s32 %v1686_v50, %v1689_v31  ;;  %vm1969_vm0 = vcmp.lt.s32.totalorder %v1948_v32, 3  ;;  %vm1970_vm1 = vcmp.lt.s32.totalorder %v1948_v32, 4  ;;  %v1975_v38 = vsel %vm1967_vm5, %v1954_v52, %v1957_v19 }
 0x1f2   : > { %v1972_v47 = vsel %vm1970_vm1, %v1960_v49, 2102212464  ;;  %v1976_v62 = vsel %vm1970_vm1, %v1963_v53, 920167782  ;;  %v1979_v61 = vsel %vm1967_vm5, %v1957_v19, %v1960_v49  ;;  %v1980_v36 = vsel %vm1970_vm1, %v1966_v57, 1326507024 }
 0x1f3   : > { %v1951_v25 = vshrl.u32 %v4643_v13, %v1950_v30  ;;  %vm1968_vm14 = vcmp.lt.s32.totalorder %v1948_v32, 2  ;;  %v1977_v44 = vsel %vm1969_vm0, %v1960_v49, %v1976_v62  ;;  %v1983_v59 = vshll.u32 %v1943_v26, 8 }
 0x1f4   : > { %v2364_v6 = vadd.s32 4294967294, %v1900_v48  ;;  %v1978_v54 = vsel %vm1968_vm14, %v1975_v38, %v1977_v44  ;;  %v1981_v50 = vsel %vm1969_vm0, %v1963_v53, %v1980_v36  ;;  %v2358_v31 = vadd.s32 4294967169, %v1733_v60 }
 0x1f5   : > { %v4679_v14 = vand.u32 2147483647, %v3191_v56  ;;  %v1692_v57 = vsub.s32 0, %v3828_v17  ;;  %v1971_v30 = vsel %vm1967_vm5, %v1951_v25, %v1954_v52  ;;  %v1973_v3 = vsel %vm1969_vm0, %v1957_v19, %v1972_v47 }
 0x1f6   : > { %v1982_v49 = vsel %vm1968_vm14, %v1979_v61, %v1981_v50  ;;  %v3849_v38 = vmul.u32.u64.low %v1983_v59, %v1978_v54  ;;  %v3850_v53 = vmul.u32.u64.high %v1983_v59, %v1978_v54, %v3849_v38  ;;  %2579 = vcosq.f32 %v3782_v12 }
 0x1f7   : > { %vm3838_vm4 = vcmp.le.f32.partialorder %v4679_v14, 0.7853982  ;;  %v3846_v26 = vmul.u32.u64.low %v1983_v59, %v1982_v49  ;;  %v3847_v48 = vmul.u32.u64.high %v1983_v59, %v1982_v49, %v3846_v26  ;;  %v1391_v60 = vshrl.u32 %v1373_v18, %v1389_v33 }
 0x1f8   : > { %v1394_v62 = vadd.s32 127, %v1393_v40  ;;  %v1739_v36 = vadd.s32 1, %v2358_v31  ;;  %2581 = vsinq.f32 %v3782_v12  ;;  %v1508_v52 = vsel %vm3818_vm3, %v3099_v5, %v3787_v2 }
 0x1f9   : > { %v1605_v19 = vcvt.s32.f32 %v3790_v42  ;;  %v1736_v47 = vand.u32 8388607, %v4599_v11  ;;  %v1390_v61 = vshll.u32 %v3683_v63, %v3796_v34  ;;  %v2355_v25 = vmin.u32 %v1692_v57, %v3828_v17 }
 0x1fa   : > { %v1974_v18 = vsel %vm1968_vm14, %v1971_v30, %v1973_v3  ;;  %vm1740_vm5 = vcmp.gt.s32.totalorder %v1739_v36, 0  ;;  %v4682_v12 = vxor.u32 2147483648, %v3762_v43  ;;  %vm2365_vm0 = vcmp.lt.s32.totalorder %v2364_v6, 0 }
 0x1fb   : > { %v3871_v2 = vmul.f32 %v1605_v19, %v1603_v10  ;;  %vm1992_vm1 = vc.u32 %v3847_v48, %v3849_v38  ;;  %v3875_v42 = vor.u32 %v1391_v60, %v1390_v61  ;;  %v1395_v63 = vshll.u32 %v1394_v62, 23 }
 0x1fc   : > { %v1299_v33 = vsel %vm4605_vm15, %v4682_v12, %v3762_v43  ;;  %v1993_v34 = vadd.s32 1, %v3850_v53  ;;  %v476_v3 = vsub.s32 4, %v2856_v1  ;;  %2583 = vcosq.f32 %v1508_v52 }
 0x1fd   : > { %v1990_v32 = vmul.u32 %v1983_v59, %v1974_v18  ;;  %v1737_v40 = vor.u32 8388608, %v1736_v47  ;;  %v1741_v44 = vsel %vm1740_vm5, %v1739_v36, 0  ;;  %2585 = vsinq.f32 %v1508_v52 }
 0x1fe   : > { %v3879_v54 = vsel %vm2365_vm0, 0, %v2364_v6  ;;  %v1694_v43 = vclz %v2355_v25  ;;  %v1994_v10 = vsel %vm1992_vm1, %v1993_v34, %v3850_v53  ;;  %v3885_v50 = vsel %vm3838_vm4, %v3191_v56, %v1299_v33 }
 0x1ff   : > { %v1995_v14 = vadd.s32 %v1994_v10, %v1990_v32  ;;  %v1743_v57 = vand.u32 31, %v1741_v44  ;;  %v3888_v30 = vor.u32 4788187, %v1395_v63  ;;  %v3893_v6 = vadd.s32 %v3685_v7, %v3681_v45 }
 0x200   : > { %v477_v49 = vsel %vm392_vm8, %v476_v3, %v2856_v1  ;;  %v1908_v26 = vsub.s32 4294967266, %v3879_v54  ;;  %v3899_v62 = vshll.u32 %v1737_v40, 8  ;;  %v3901_v36 = vpop.eup %2579  ;;  %v2356_v52 = vadd.s32 4294967294, %v1694_v43 }
 0x201   : > { %v1996_v53 = vadd.s32 536870912, %v1995_v14  ;;  %v1744_v60 = vsub.s32 32, %v1743_v57  ;;  %v1742_v19 = vshrl.u32 %v1741_v44, 5  ;;  %v1746_v47 = vshll.u32 %v4643_v13, %v1743_v57 }
 0x202   : > { %v1749_v61 = vshll.u32 %v4650_v51, %v1743_v57  ;;  %v3905_v45 = vpop.eup %2581  ;;  %v1752_v18 = vshll.u32 %v4619_v23, %v1743_v57  ;;  %v1755_v33 = vshll.u32 %v4620_v37, %v1743_v57  ;;  %v1758_v34 = vshll.u32 %v4651_v22, %v1743_v57 }
 0x203   : > { %v3907_v7 = vshrl.u32 %v1996_v53, 30  ;;  %v1747_v1 = vshrl.u32 %v4650_v51, %v1744_v60  ;;  %v1750_v25 = vshrl.u32 %v4619_v23, %v1744_v60  ;;  %v1753_v12 = vshrl.u32 %v4620_v37, %v1744_v60 }
 0x204   : > { %v1756_v63 = vshrl.u32 %v4651_v22, %v1744_v60  ;;  %v1759_v44 = vshrl.u32 %v4645_v8, %v1744_v60  ;;  %vm1761_vm8 = vcmp.lt.s32.totalorder %v1742_v19, 1  ;;  %v479_v53 = vsel %vm3076_vm11, 0, %v477_v49 }
 0x205   : > { %4683 = vst [vmem:[#allocation42_spill] sm:$0xff] %v3907_v7  ;;  %v1998_v3 = vshll.u32 %v3907_v7, 30  ;;  %v1748_v32 = vor.u32 %v1747_v1, %v1746_v47  ;;  %v1751_v40 = vor.u32 %v1750_v25, %v1749_v61  ;;  %v1754_v43 = vor.u32 %v1753_v12, %v1752_v18 }
 0x206   : > { %v1757_v10 = vor.u32 %v1756_v63, %v1755_v33  ;;  %v3920_v11 = vpop.eup %2583  ;;  %v1745_v59 = vshrl.u32 %v4643_v13, %v1744_v60  ;;  %v1760_v39 = vor.u32 %v1759_v44, %v1758_v34  ;;  %vm1764_vm14 = vcmp.lt.s32.totalorder %v1742_v19, 4  ;;  %v4685_v33 = vld [vmem:[#allocation16_spill] sm:$0xff]  ;;  %v4686_v34 = vld [vmem:[#allocation14_spill] sm:$0xff] }
 0x207   : > { %4684 = vst [vmem:[#allocation43_spill] sm:$0xff] %v3920_v11  ;;  %v3922_v31 = vsub.s32 %v1995_v14, %v1998_v3  ;;  %v3925_v22 = vpop.eup %2585  ;;  %vm1763_vm5 = vcmp.lt.s32.totalorder %v1742_v19, 3  ;;  %v1766_v57 = vsel %vm1764_vm14, %v1754_v43, 2102212464  ;;  %v1769_v8 = vsel %vm1761_vm8, %v1748_v32, %v1751_v40 }
 0x208   : > { %v1770_v47 = vsel %vm1764_vm14, %v1757_v10, 920167782  ;;  %vm1762_vm0 = vcmp.lt.s32.totalorder %v1742_v19, 2  ;;  %v1773_v55 = vsel %vm1761_vm8, %v1751_v40, %v1754_v43  ;;  %v483_v49 = vand.u32 3, %v479_v53  ;;  %v4687_v53 = vld [vmem:[#allocation6_spill] sm:$0xff] }
 0x209   : > { %v1771_v61 = vsel %vm1763_vm5, %v1754_v43, %v1770_v47  ;;  %v1765_v1 = vsel %vm1761_vm8, %v1745_v59, %v1748_v32  ;;  %v1767_v14 = vsel %vm1763_vm5, %v1751_v40, %v1766_v57  ;;  %v1774_v60 = vsel %vm1764_vm14, %v1760_v39, 1326507024 }
 0x20a   : > { %v1772_v25 = vsel %vm1762_vm0, %v1769_v8, %v1771_v61  ;;  %v2001_v18 = vsub.s32 0, %v3922_v31  ;;  %v1775_v12 = vsel %vm1763_vm5, %v1757_v10, %v1774_v60  ;;  %v486_v63 = vxor.u32 2147483648, %v4685_v33  ;;  %v4689_v60 = vld [vmem:[#allocation13_spill] sm:$0xff] }
 0x20b   : > { %v489_v3 = vxor.u32 2147483648, %v4686_v34  ;;  %vm2357_vm11 = vcmp.lt.s32.totalorder %v2356_v52, 0  ;;  %v1776_v44 = vsel %vm1762_vm0, %v1773_v55, %v1775_v12  ;;  %v1768_v32 = vsel %vm1762_vm0, %v1765_v1, %v1767_v14  ;;  %v4688_v14 = vld [vmem:[#allocation4_spill] sm:$0xff] }
 0x20c   : > { %v3936_v47 = vmul.u32.u64.low %v3899_v62, %v1772_v25  ;;  %v3937_v43 = vmul.u32.u64.high %v3899_v62, %v1772_v25, %v3936_v47  ;;  %v3943_v39 = vmul.u32.u64.low %v3899_v62, %v1776_v44  ;;  %v3944_v40 = vmul.u32.u64.high %v3899_v62, %v1776_v44, %v3943_v39  ;;  %v4693_v44 = vld [vmem:[#allocation29_spill] sm:$0xff] }
 0x20d   : > { %v3946_v10 = vadd.s32 127, %v1908_v26  ;;  %vm485_vm1 = vcmp.eq.s32.totalorder %v483_v49, 0  ;;  %vm488_vm8 = vcmp.eq.s32.totalorder %v483_v49, 2  ;;  %v579_v57 = vsub.s32 4, %v4687_v53  ;;  %v4694_v39 = vld [vmem:[#allocation12_spill] sm:$0xff] }
 0x20e   : > { %v3949_v8 = vsel %vm2357_vm11, 0, %v2356_v52  ;;  %v2367_v61 = vmin.u32 %v2001_v18, %v3922_v31  ;;  %v487_v55 = vsel %vm485_vm1, %v4686_v34, %v486_v63  ;;  %v490_v25 = vsel %vm488_vm8, %v489_v3, %v4685_v33  ;;  %v4691_v34 = vld [vmem:[#allocation9_spill] sm:$0xff]  ;;  %v4692_v33 = vld [vmem:[#allocation2_spill] sm:$0xff] }
 0x20f   : > { %v1784_v19 = vmul.u32 %v3899_v62, %v1768_v32  ;;  %v1787_v1 = vadd.s32 1, %v3937_v43  ;;  %v580_v26 = vsel %vm495_vm2, %v579_v57, %v4687_v53  ;;  %v692_v12 = vxor.u32 2147483648, %v4689_v60 }
 0x210   : > { %vm1786_vm14 = vc.u32 %v3944_v40, %v3936_v47  ;;  %v582_v18 = vsel %vm3242_vm9, 0, %v580_v26  ;;  %v589_v63 = vxor.u32 2147483648, %v3662_v20  ;;  %vm691_vm5 = vcmp.eq.s32.totalorder %v4691_v34, 0 }
 0x211   : > { %vm688_vm0 = vweird.f32 %v4692_v33  ;;  %v1788_v62 = vsel %vm1786_vm14, %v1787_v1, %v3937_v43  ;;  %v586_v3 = vand.u32 3, %v582_v18  ;;  %v592_v32 = vxor.u32 2147483648, %v4693_v44  ;;  %v4695_v43 = vld [vmem:[#allocation3_spill] sm:$0xff] }
 0x212   : > { %v693_v53 = vsel %vm691_vm5, %v4694_v39, %v692_v12  ;;  %v1904_v57 = vsub.s32 32, %v3879_v54  ;;  %v1910_v59 = vshll.u32 %v3946_v10, 23  ;;  %v3974_v26 = vadd.s32 %v3751_v46, %v3757_v27 }
 0x213   : > { %v1789_v52 = vadd.s32 %v1788_v62, %v1784_v19  ;;  %v1702_v7 = vsub.s32 4294967266, %v3949_v8  ;;  %vm482_vm2 = vweird.f32 %v2722_v29  ;;  %vm484_vm9 = vcmp.lt.s32.totalorder %v483_v49, 2 }
 0x214   : > { %vm588_vm11 = vcmp.eq.s32.totalorder %v586_v3, 0  ;;  %vm791_vm1 = vweird.f32 %v4695_v43  ;;  %v491_v18 = vsel %vm484_vm9, %v487_v55, %v490_v25  ;;  %vm591_vm8 = vcmp.eq.s32.totalorder %v586_v3, 2 }
 0x215   : > { %v1790_v1 = vadd.s32 536870912, %v1789_v52  ;;  %v590_v12 = vsel %vm588_vm11, %v4693_v44, %v589_v63  ;;  %v2003_v11 = vclz %v2367_v61  ;;  %vm587_vm14 = vcmp.lt.s32.totalorder %v586_v3, 2  ;;  %v4696_v63 = vld [vmem:[#allocation21_spill] sm:$0xff]  ;;  %v4697_v3 = vld [vmem:[#allocation10_spill] sm:$0xff] }
 0x216   : > { %v593_v10 = vsel %vm591_vm8, %v592_v32, %v3662_v20  ;;  %v695_v27 = vxor.u32 2147483648, %v4694_v39  ;;  %vm585_vm5 = vweird.f32 %v4688_v14  ;;  %vm694_vm15 = vcmp.eq.s32.totalorder %v4691_v34, 2  ;;  %v4698_v14 = vld [vmem:[#allocation20_spill] sm:$0xff] }
 0x217   : > { %v3982_v46 = vshrl.u32 %v1790_v1, 30  ;;  %v594_v19 = vsel %vm587_vm14, %v590_v12, %v593_v10  ;;  %v492_v49 = vsel %vm482_vm2, nan, %v491_v18  ;;  %v795_v61 = vxor.u32 2147483648, %v4696_v63  ;;  %v4699_v1 = vld [vmem:[#allocation7_spill] sm:$0xff] }
 0x218   : > { %v595_v55 = vsel %vm585_vm5, nan, %v594_v19  ;;  %v696_v25 = vsel %vm694_vm15, %v695_v27, %v4689_v60  ;;  %vm690_vm9 = vcmp.lt.s32.totalorder %v4691_v34, 2  ;;  %vm794_vm11 = vcmp.eq.s32.totalorder %v4697_v3, 0 }
 0x219   : > { %v1792_v62 = vshll.u32 %v3982_v46, 30  ;;  %v2038_v20 = vpack.c.bf16 %v595_v55, %v492_v49  ;;  %v697_v44 = vsel %vm690_vm9, %v693_v53, %v696_v25  ;;  %v796_v32 = vsel %vm794_vm11, %v4698_v14, %v795_v61  ;;  %v4700_v49 = vld [vmem:[#allocation15_spill] sm:$0xff] }
 0x21a   : > { %v798_v39 = vxor.u32 2147483648, %v4698_v14  ;;  %v802_v29 = vand.u32 2147483647, %v4699_v1  ;;  %v1905_v18 = vshll.u32 %v3759_v4, %v3879_v54  ;;  %v698_v12 = vsel %vm688_vm0, nan, %v697_v44 }
 0x21b   : > { %v3998_v60 = vsub.s32 %v1789_v52, %v1792_v62  ;;  %2440 = vmatprep.mubr.bf16.mxu0 %v2038_v20  ;;  %vm797_vm15 = vcmp.eq.s32.totalorder %v4697_v3, 2  ;;  %v1906_v34 = vshrl.u32 %v3893_v6, %v1904_v57  ;;  %v2368_v53 = vadd.s32 4294967294, %v2003_v11  ;;  %v4701_v11 = vld [vmem:[#allocation18_spill] sm:$0xff] }
 0x21c   : > { %vm793_vm2 = vcmp.lt.s32.totalorder %v4697_v3, 2  ;;  %v799_v10 = vsel %vm797_vm15, %v798_v39, %v4696_v63  ;;  %v4006_v27 = vor.u32 4788187, %v1910_v59  ;;  %v1703_v19 = vadd.s32 127, %v1702_v7  ;;  %v4702_v39 = vld [vmem:[#allocation23_spill] sm:$0xff] }
 0x21d   : > { %v1795_v4 = vsub.s32 0, %v3998_v60  ;;  %v800_v54 = vsel %vm793_vm2, %v796_v32, %v799_v10  ;;  %v809_v33 = vand.u32 8388607, %v802_v29  ;;  %v819_v6 = vshll.u32 %v4643_v13, %v4700_v49 }
 0x21e   : > { %v801_v52 = vsel %vm791_vm1, nan, %v800_v54  ;;  %v820_v57 = vshrl.u32 %v4650_v51, %v4701_v11  ;;  %v822_v7 = vshll.u32 %v4650_v51, %v4700_v49  ;;  %v823_v25 = vshrl.u32 %v4619_v23, %v4701_v11  ;;  %v4703_v54 = vld [vmem:[#allocation27_spill] sm:$0xff] }
 0x21f   : > { %v2359_v55 = vmin.u32 %v1795_v4, %v3998_v60  ;;  %v2039_v59 = vpack.c.bf16 %v801_v52, %v698_v12  ;;  %vm2369_vm0 = vcmp.lt.s32.totalorder %v2368_v53, 0  ;;  %v825_v63 = vshll.u32 %v4619_v23, %v4700_v49  ;;  %v4704_v52 = vld [vmem:[#allocation24_spill] sm:$0xff]  ;;  %v4705_v49 = vld [vmem:[#allocation25_spill] sm:$0xff] }
 0x220   : > { %v821_v43 = vor.u32 %v820_v57, %v819_v6  ;;  %v826_v61 = vshrl.u32 %v4620_v37, %v4701_v11  ;;  %v1698_v62 = vsub.s32 32, %v3949_v8  ;;  %v1704_v20 = vshll.u32 %v1703_v19, 23 }
 0x221   : > { %v1797_v3 = vclz %v2359_v55  ;;  %2441 = vmatmul.mubr.bf16.vlgmr.msra.gmra.mrb[16].mxu0 %v2039_v59  ;;  %v824_v44 = vor.u32 %v823_v25, %v822_v7  ;;  %v810_v14 = vor.u32 8388608, %v809_v33  ;;  %vm834_vm1 = vcmp.lt.s32.totalorder %v4702_v39, 1 }
 0x222   : > { %v827_v32 = vor.u32 %v826_v61, %v825_v63  ;;  %vm836_vm8 = vcmp.lt.s32.totalorder %v4702_v39, 3  ;;  %v4029_v12 = vsel %vm2369_vm0, 0, %v2368_v53  ;;  %vm835_vm14 = vcmp.lt.s32.totalorder %v4702_v39, 2 }
 0x223   : > { %v2360_v10 = vadd.s32 4294967294, %v1797_v3  ;;  %v842_v4 = vsel %vm834_vm1, %v821_v43, %v824_v44  ;;  %v848_v19 = vsel %vm836_vm8, %v4704_v52, %v4703_v54  ;;  %v1699_v57 = vshll.u32 %v3828_v17, %v3949_v8 }
 0x224   : > { %v839_v33 = vsel %vm837_vm13, %v827_v32, 2102212464  ;;  %v844_v6 = vsel %vm836_vm8, %v827_v32, %v4705_v49  ;;  %v846_v53 = vsel %vm834_vm1, %v824_v44, %v827_v32  ;;  %v818_v55 = vshrl.u32 %v4643_v13, %v4701_v11  ;;  %v4706_v11 = vld [vmem:[#allocation11_spill] sm:$0xff] }
 0x225   : > { %v845_v59 = vsel %vm835_vm14, %v842_v4, %v844_v6  ;;  %v849_v7 = vsel %vm835_vm14, %v846_v53, %v848_v19  ;;  %v1700_v25 = vshrl.u32 %v3974_v26, %v1698_v62  ;;  %v4054_v63 = vor.u32 4788187, %v1704_v20 }
 0x226   : > { %vm2361_vm13 = vcmp.lt.s32.totalorder %v2360_v10, 0  ;;  %v850_v61 = vshll.u32 %v810_v14, 8  ;;  %v2011_v3 = vsub.s32 4294967266, %v4029_v12  ;;  %v838_v17 = vsel %vm834_vm1, %v818_v55, %v821_v43  ;;  %v4710_v55 = vld [vmem:[#allocation32_spill] sm:$0xff] }
 0x227   : > { %v840_v8 = vsel %vm836_vm8, %v824_v44, %v839_v33  ;;  %v905_v32 = vand.u32 2147483647, %v4706_v11  ;;  %v4707_v26 = vand.u32 2147483647, %v3888_v30  ;;  %v4708_v62 = vcvt.s32.f32 %v3875_v42 }
 0x228   : > { %v4062_v4 = vmul.u32.u64.low %v850_v61, %v849_v7  ;;  %v4063_v54 = vmul.u32.u64.high %v850_v61, %v849_v7, %v4062_v4  ;;  %v4065_v52 = vmul.u32.u64.low %v850_v61, %v845_v59  ;;  %v4066_v19 = vmul.u32.u64.high %v850_v61, %v845_v59, %v4065_v52 }
 0x229   : > { %v4073_v20 = vmul.f32 %v4708_v62, %v4707_v26  ;;  %v4075_v14 = vor.u32 %v1906_v34, %v1905_v18  ;;  %v1912_v43 = vand.u32 2147483647, %v4006_v27  ;;  %v4078_v44 = vsel %vm2361_vm13, 0, %v2360_v10  ;;  %v4709_v18 = vld [vmem:[#allocation30_spill] sm:$0xff] }
 0x22a   : > { %v4080_v33 = vor.u32 %v1700_v25, %v1699_v57  ;;  %v1991_v49 = vadd.s32 %v3849_v38, %v3847_v48  ;;  %v841_v6 = vsel %vm835_vm14, %v838_v17, %v840_v8  ;;  %v912_v30 = vand.u32 8388607, %v905_v32 }
 0x22b   : > { %v1706_v42 = vand.u32 2147483647, %v4054_v63  ;;  %v2012_v53 = vadd.s32 127, %v2011_v3  ;;  %v922_v34 = vshll.u32 %v4643_v13, %v4709_v18  ;;  %v923_v10 = vshrl.u32 %v4650_v51, %v4710_v55  ;;  %v4711_v63 = vld [vmem:[#allocation22_spill] sm:$0xff] }
 0x22c   : > { %v1785_v57 = vadd.s32 %v3936_v47, %v3944_v40  ;;  %v1805_v48 = vsub.s32 4294967266, %v4078_v44  ;;  %vm859_vm5 = vc.u32 %v4063_v54, %v4065_v52  ;;  %v860_v38 = vadd.s32 1, %v4066_v19 }
 0x22d   : > { %v857_v39 = vmul.u32 %v850_v61, %v841_v6  ;;  %v924_v59 = vor.u32 %v923_v10, %v922_v34  ;;  %v925_v7 = vshll.u32 %v4650_v51, %v4709_v18  ;;  %v926_v25 = vshrl.u32 %v4619_v23, %v4710_v55 }
 0x22e   : > { %vm4610_vm9 = vcmp.lt.s32.totalorder %v4711_v63, 0  ;;  %v861_v3 = vsel %vm859_vm5, %v860_v38, %v4066_v19  ;;  %v913_v47 = vor.u32 8388608, %v912_v30  ;;  %v928_v40 = vshll.u32 %v4619_v23, %v4709_v18  ;;  %v4712_v30 = vld [vmem:[#allocation36_spill] sm:$0xff] }
 0x22f   : > { %v929_v17 = vshrl.u32 %v4620_v37, %v4710_v55  ;;  %v2007_v61 = vsub.s32 32, %v4029_v12  ;;  %v2013_v8 = vshll.u32 %v2012_v53, 23  ;;  %v862_v4 = vadd.s32 %v861_v3, %v857_v39 }
 0x230   : > { %v927_v26 = vor.u32 %v926_v25, %v925_v7  ;;  %v1806_v51 = vadd.s32 127, %v1805_v48  ;;  %vm937_vm11 = vcmp.lt.s32.totalorder %v3471_v24, 1  ;;  %vm939_vm15 = vcmp.lt.s32.totalorder %v3471_v24, 3 }
 0x231   : > { %v930_v62 = vor.u32 %v929_v17, %v928_v40  ;;  %v863_v6 = vadd.s32 536870912, %v862_v4  ;;  %vm938_vm2 = vcmp.lt.s32.totalorder %v3471_v24, 2  ;;  %v951_v37 = vsel %vm939_vm15, %v3597_v28, %v3634_v16  ;;  %v4716_v40 = vld [vmem:[#allocation28_spill] sm:$0xff] }
 0x232   : > { %v945_v23 = vsel %vm937_vm11, %v924_v59, %v927_v26  ;;  %v953_v34 = vshll.u32 %v913_v47, 8  ;;  %v4713_v10 = vand.u32 2147483647, %v4711_v63  ;;  %v2009_v38 = vshrl.u32 %v1991_v49, %v2007_v61 }
 0x233   : > { %v942_v19 = vsel %vm940_vm6, %v930_v62, 2102212464  ;;  %v947_v53 = vsel %vm939_vm15, %v930_v62, %v4712_v30  ;;  %v949_v18 = vsel %vm937_vm11, %v927_v26, %v930_v62  ;;  %v4132_v39 = vshrl.u32 %v863_v6, 30 }
 0x234   : > { %vm4128_vm0 = vcmp.le.f32.partialorder %v4713_v10, 0.7853982  ;;  %v921_v28 = vshrl.u32 %v4643_v13, %v4710_v55  ;;  %v948_v16 = vsel %vm938_vm2, %v945_v23, %v947_v53  ;;  %v1801_v7 = vsub.s32 32, %v4078_v44 }
 0x235   : > { %v952_v25 = vsel %vm938_vm2, %v949_v18, %v951_v37  ;;  %v4141_v3 = vmul.u32.u64.low %v953_v34, %v948_v16  ;;  %v4142_v47 = vmul.u32.u64.high %v953_v34, %v948_v16, %v4141_v3  ;;  %vm1319_vm6 = vcmp.lt.s32.totalorder %v4716_v40, 0 }
 0x236   : > { %v2008_v49 = vshll.u32 %v3922_v31, %v4029_v12  ;;  %v865_v17 = vshll.u32 %v4132_v39, 30  ;;  %v941_v13 = vsel %vm937_vm11, %v921_v28, %v924_v59  ;;  %v943_v55 = vsel %vm939_vm15, %v927_v26, %v942_v19 }
 0x237   : > { %v2014_v61 = vor.u32 4788187, %v2013_v8  ;;  %v1807_v62 = vshll.u32 %v1806_v51, 23  ;;  %v4153_v6 = vmul.u32.u64.low %v953_v34, %v952_v25  ;;  %v4154_v23 = vmul.u32.u64.high %v953_v34, %v952_v25, %v4153_v6 }
 0x238   : > { %v4717_v37 = vxor.u32 2147483648, %v3871_v2  ;;  %v1914_v31 = vcvt.s32.f32 %v4075_v14  ;;  %v1708_v12 = vcvt.s32.f32 %v4080_v33  ;;  %v4163_v53 = vsub.s32 %v862_v4, %v865_v17 }
 0x239   : > { %v2010_v59 = vor.u32 %v2009_v38, %v2008_v49  ;;  %v1803_v18 = vshrl.u32 %v1785_v57, %v1801_v7  ;;  %v944_v8 = vsel %vm938_vm2, %v941_v13, %v943_v55  ;;  %v963_v26 = vadd.s32 1, %v4142_v47  ;;  %v4721_v13 = vld [vmem:[#allocation34_spill] sm:$0xff] }
 0x23a   : > { %v1608_v30 = vsel %vm4610_vm9, %v4717_v37, %v3871_v2  ;;  %v1401_v51 = vxor.u32 2147483648, %v4073_v20  ;;  %v1915_v19 = vmul.f32 %v1914_v31, %v1912_v43  ;;  %v1709_v10 = vmul.f32 %v1708_v12, %v1706_v42 }
 0x23b   : > { %v868_v2 = vsub.s32 0, %v4163_v53  ;;  %v2015_v14 = vand.u32 2147483647, %v2014_v61  ;;  %v1802_v33 = vshll.u32 %v3998_v60, %v4078_v44  ;;  %v1808_v4 = vor.u32 4788187, %v1807_v62  ;;  %v4725_v62 = vld [vmem:[#allocation37_spill] sm:$0xff] }
 0x23c   : > { %vm962_vm1 = vc.u32 %v4154_v23, %v4141_v3  ;;  %2587 = vcosq.f32 %v3885_v50  ;;  %v4718_v24 = vand.u32 2147483647, %v4716_v40  ;;  %v960_v43 = vmul.u32 %v953_v34, %v944_v8 }
 0x23d   : > { %v2323_v27 = vmin.u32 %v868_v2, %v4163_v53  ;;  %v1611_v42 = vsel %vm4128_vm0, %v4711_v63, %v1608_v30  ;;  %v2017_v60 = vcvt.s32.f32 %v2010_v59  ;;  %v1804_v44 = vor.u32 %v1803_v18, %v1802_v33 }
 0x23e   : > { %vm4179_vm8 = vcmp.le.f32.partialorder %v4718_v24, 0.7853982  ;;  %v964_v38 = vsel %vm962_vm1, %v963_v26, %v4142_v47  ;;  %2589 = vsinq.f32 %v3885_v50  ;;  %v1916_v28 = vxor.u32 2147483648, %v1915_v19 }
 0x23f   : > { %v870_v16 = vclz %v2323_v27  ;;  %v965_v7 = vadd.s32 %v964_v38, %v960_v43  ;;  %v1402_v25 = vsel %vm1319_vm6, %v1401_v51, %v4073_v20  ;;  %v1710_v49 = vxor.u32 2147483648, %v1709_v10 }
 0x240   : > { %v2018_v17 = vmul.f32 %v2017_v60, %v2015_v14  ;;  %v1809_v34 = vand.u32 2147483647, %v1808_v4  ;;  %2591 = vcosq.f32 %v1611_v42  ;;  %vm4606_vm14 = vcmp.lt.s32.totalorder %v4721_v13, 0 }
 0x241   : > { %v2324_v55 = vadd.s32 4294967294, %v870_v16  ;;  %v966_v61 = vadd.s32 536870912, %v965_v7  ;;  %2593 = vsinq.f32 %v1611_v42  ;;  %v4722_v47 = vand.u32 2147483647, %v4721_v13  ;;  %v4729_v42 = vld [vmem:[#allocation8_spill] sm:$0xff] }
 0x242   : > { %vm4608_vm5 = vcmp.lt.s32.totalorder %v4725_v62, 0  ;;  %v1811_v6 = vcvt.s32.f32 %v1804_v44  ;;  %v1405_v20 = vsel %vm4179_vm8, %v4716_v40, %v1402_v25  ;;  %v1917_v37 = vsel %vm4606_vm14, %v1916_v28, %v1915_v19 }
 0x243   : > { %vm4195_vm13 = vcmp.le.f32.partialorder %v4722_v47, 0.7853982  ;;  %vm2325_vm11 = vcmp.lt.s32.totalorder %v2324_v55, 0  ;;  %v4205_v30 = vshrl.u32 %v966_v61, 30  ;;  %v1711_v31 = vsel %vm4608_vm5, %v1710_v49, %v1709_v10 }
 0x244   : > { %v2019_v12 = vxor.u32 2147483648, %v2018_v17  ;;  %v1812_v59 = vmul.f32 %v1811_v6, %v1809_v34  ;;  %v873_v18 = vsel %vm2325_vm11, 0, %v2324_v55  ;;  %v858_v8 = vadd.s32 %v4065_v52, %v4063_v54  ;;  %v4733_v6 = vld [vmem:[#allocation5_spill] sm:$0xff] }
 0x245   : > { %v874_v26 = vsub.s32 32, %v873_v18  ;;  %v878_v51 = vsub.s32 4294967266, %v873_v18  ;;  %v968_v2 = vshll.u32 %v4205_v30, 30  ;;  %2595 = vcosq.f32 %v1405_v20 }
 0x246   : > { %v1920_v19 = vsel %vm4195_vm13, %v4721_v13, %v1917_v37  ;;  %v4726_v14 = vand.u32 2147483647, %v4725_v62  ;;  %vm4607_vm2 = vcmp.lt.s32.totalorder %v3676_v41, 0  ;;  %v4222_v10 = vpop.eup %2587  ;;  %v875_v54 = vshll.u32 %v4163_v53, %v873_v18 }
 0x247   : > { %v876_v52 = vshrl.u32 %v858_v8, %v874_v26  ;;  %v879_v4 = vadd.s32 127, %v878_v51  ;;  %v4225_v24 = vsub.s32 %v965_v7, %v968_v2  ;;  %2597 = vsinq.f32 %v1405_v20 }
 0x248   : > { %vm4217_vm15 = vcmp.le.f32.partialorder %v4726_v14, 0.7853982  ;;  %v1813_v43 = vxor.u32 2147483648, %v1812_v59  ;;  %v1094_v60 = vsub.s32 4, %v4729_v42  ;;  %v4231_v44 = vpop.eup %2589  ;;  %v2020_v38 = vsel %vm4607_vm2, %v2019_v12, %v2018_v17 }
 0x249   : > { %v1714_v27 = vsel %vm4217_vm15, %v4725_v62, %v1711_v31  ;;  %v877_v28 = vor.u32 %v876_v52, %v875_v54  ;;  %v880_v16 = vshll.u32 %v879_v4, 23  ;;  %v971_v53 = vsub.s32 0, %v4225_v24 }
 0x24a   : > { %2599 = vcosq.f32 %v1920_v19  ;;  %v4730_v7 = vand.u32 2147483647, %v3676_v41  ;;  %v4242_v49 = vpop.eup %2591  ;;  %vm4609_vm11 = vcmp.lt.s32.totalorder %v3768_v58, 0  ;;  %v1095_v20 = vsel %vm1010_vm7, %v1094_v60, %v4729_v42 }
 0x24b   : > { %2601 = vsinq.f32 %v1920_v19  ;;  %v881_v34 = vor.u32 4788187, %v880_v16  ;;  %v2327_v55 = vmin.u32 %v971_v53, %v4225_v24  ;;  %v4246_v17 = vpop.eup %2593  ;;  %v1814_v47 = vsel %vm4609_vm11, %v1813_v43, %v1812_v59  ;;  %v4739_v16 = vld [vmem:[#allocation38_spill] sm:$0xff] }
 0x24c   : > { %vm4238_vm1 = vcmp.le.f32.partialorder %v4730_v7, 0.7853982  ;;  %2603 = vcosq.f32 %v1714_v27  ;;  %v884_v31 = vcvt.s32.f32 %v877_v28  ;;  %v888_v12 = vsub.s32 4, %v4132_v39 }
 0x24d   : > { %v2023_v61 = vsel %vm4238_vm1, %v3676_v41, %v2020_v38  ;;  %v882_v37 = vand.u32 2147483647, %v881_v34  ;;  %v973_v18 = vclz %v2327_v55  ;;  %2605 = vsinq.f32 %v1714_v27  ;;  %v4738_v27 = vld [vmem:[#allocation19_spill] sm:$0xff] }
 0x24e   : > { %v4734_v8 = vand.u32 2147483647, %v3768_v58  ;;  %2607 = vcosq.f32 %v2023_v61  ;;  %v1097_v19 = vsel %vm3583_vm12, 0, %v1095_v20  ;;  %vm804_vm7 = vcmp.lt.s32.totalorder %v4699_v1, 0 }
 0x24f   : > { %v885_v51 = vmul.f32 %v884_v31, %v882_v37  ;;  %v2328_v2 = vadd.s32 4294967294, %v973_v18  ;;  %v4265_v14 = vpop.eup %2595  ;;  %2609 = vsinq.f32 %v2023_v61  ;;  %v889_v4 = vsel %vm804_vm7, %v888_v12, %v4132_v39  ;;  %v4740_v61 = vld [vmem:[#allocation31_spill] sm:$0xff] }
 0x250   : > { %vm4259_vm14 = vcmp.le.f32.partialorder %v4734_v8, 0.7853982  ;;  %v1197_v43 = vsub.s32 4, %v4738_v27  ;;  %v961_v60 = vadd.s32 %v4141_v3, %v4154_v23  ;;  %v1101_v28 = vand.u32 3, %v1097_v19  ;;  %v4743_v23 = vld [vmem:[#allocation39_spill] sm:$0xff] }
 0x251   : > { %v1817_v54 = vsel %vm4259_vm14, %v3768_v58, %v1814_v47  ;;  %v886_v52 = vxor.u32 2147483648, %v885_v51  ;;  %vm2329_vm2 = vcmp.lt.s32.totalorder %v2328_v2, 0  ;;  %v4273_v42 = vpop.eup %2597  ;;  %v1403_v53 = vsub.s32 4, %v4739_v16 }
 0x252   : > { %v976_v38 = vsel %vm2329_vm2, 0, %v2328_v2  ;;  %v1300_v47 = vsub.s32 4, %v4740_v61  ;;  %2611 = vcosq.f32 %v1817_v54  ;;  %vm4283_vm12 = vcmp.le.f32.partialorder %v802_v29, 0.7853982 }
 0x253   : > { %v887_v7 = vsel %vm804_vm7, %v886_v52, %v885_v51  ;;  %v977_v34 = vsub.s32 32, %v976_v38  ;;  %v981_v55 = vsub.s32 4294967266, %v976_v38  ;;  %v1104_v3 = vxor.u32 2147483648, %v3825_v15 }
 0x254   : > { %v4279_v20 = vpop.eup %2599  ;;  %v1107_v37 = vxor.u32 2147483648, %v4743_v23  ;;  %v978_v12 = vshll.u32 %v4225_v24, %v976_v38  ;;  %vm4744_vm2 = vcmp.lt.s32.totalorder %v2937_v35, 0  ;;  %v890_v29 = vsel %vm4283_vm12, %v4699_v1, %v887_v7 }
 0x255   : > { %v4289_v31 = vpop.eup %2601  ;;  %v979_v18 = vshrl.u32 %v961_v60, %v977_v34  ;;  %v982_v8 = vadd.s32 127, %v981_v55  ;;  %v1198_v51 = vsel %vm4744_vm2, %v1197_v43, %v4738_v27  ;;  %v891_v59 = vsel %vm4283_vm12, 0, %v889_v4 }
 0x256   : > { %v4295_v2 = vpop.eup %2603  ;;  %vm1103_vm7 = vcmp.eq.s32.totalorder %v1101_v28, 0  ;;  %v1404_v24 = vsel %vm1319_vm6, %v1403_v53, %v4739_v16  ;;  %vm4307_vm5 = vcmp.le.f32.partialorder %v905_v32, 0.7853982  ;;  %vm1106_vm2 = vcmp.eq.s32.totalorder %v1101_v28, 2 }
 0x257   : > { %v980_v52 = vor.u32 %v979_v18, %v978_v12  ;;  %v983_v27 = vshll.u32 %v982_v8, 23  ;;  %vm4747_vm11 = vcmp.lt.s32.totalorder %v3191_v56, 0  ;;  %v4314_v60 = vpop.eup %2605  ;;  %2613 = vsinq.f32 %v1817_v54 }
 0x258   : > { %v1301_v43 = vsel %vm4747_vm11, %v1300_v47, %v4740_v61  ;;  %v1105_v4 = vsel %vm1103_vm7, %v4743_v23, %v1104_v3  ;;  %v1108_v38 = vsel %vm1106_vm2, %v1107_v37, %v3825_v15  ;;  %v1200_v32 = vsel %vm3743_vm10, 0, %v1198_v51  ;;  %v4320_v16 = vpop.eup %2607 }
 0x259   : > { %2615 = vcosq.f32 %v890_v29  ;;  %v984_v53 = vor.u32 4788187, %v983_v27  ;;  %v991_v7 = vsub.s32 4, %v4205_v30  ;;  %v1406_v34 = vsel %vm4179_vm8, 0, %v1404_v24  ;;  %v4325_v55 = vpop.eup %2609 }
 0x25a   : > { %2617 = vsinq.f32 %v890_v29  ;;  %v4327_v54 = vand.u32 3, %v891_v59  ;;  %vm907_vm6 = vcmp.lt.s32.totalorder %v4706_v11, 0  ;;  %v1303_v0 = vsel %vm3838_vm4, 0, %v1301_v43  ;;  %v4748_v59 = vld [vmem:[#allocation26_spill] sm:$0xff] }
 0x25b   : > { %v985_v15 = vand.u32 2147483647, %v984_v53  ;;  %v987_v61 = vcvt.s32.f32 %v980_v52  ;;  %vm1102_vm10 = vcmp.lt.s32.totalorder %v1101_v28, 2  ;;  %v1204_v47 = vand.u32 3, %v1200_v32 }
 0x25c   : > { %v1109_v39 = vsel %vm1102_vm10, %v1105_v4, %v1108_v38  ;;  %v1207_v57 = vxor.u32 2147483648, %v3905_v45  ;;  %v1210_v3 = vxor.u32 2147483648, %v3901_v36  ;;  %v1410_v23 = vand.u32 3, %v1406_v34  ;;  %v4340_v28 = vpop.eup %2611 }
 0x25d   : > { %v988_v37 = vmul.f32 %v987_v61, %v985_v15  ;;  %v992_v12 = vsel %vm907_vm6, %v991_v7, %v4205_v30  ;;  %v1307_v9 = vand.u32 3, %v1303_v0  ;;  %v1413_v18 = vxor.u32 2147483648, %v4273_v42  ;;  %v4750_v7 = vld [vmem:[#allocation33_spill] sm:$0xff] }
 0x25e   : > { %v1310_v8 = vxor.u32 2147483648, %v4231_v44  ;;  %v1313_v51 = vxor.u32 2147483648, %v4222_v10  ;;  %v1416_v29 = vxor.u32 2147483648, %v4265_v14  ;;  %v1506_v24 = vsub.s32 4, %v4748_v59 }
 0x25f   : > { %v989_v52 = vxor.u32 2147483648, %v988_v37  ;;  %vm1205_vm4 = vcmp.lt.s32.totalorder %v1204_v47, 2  ;;  %vm1206_vm12 = vcmp.eq.s32.totalorder %v1204_v47, 0  ;;  %vm1209_vm7 = vcmp.eq.s32.totalorder %v1204_v47, 2 }
 0x260   : > { %v994_v30 = vsel %vm4307_vm5, 0, %v992_v12  ;;  %v1208_v27 = vsel %vm1206_vm12, %v3901_v36, %v1207_v57  ;;  %v1211_v43 = vsel %vm1209_vm7, %v1210_v3, %v3905_v45  ;;  %vm1412_vm2 = vcmp.eq.s32.totalorder %v1410_v23, 0 }
 0x261   : > { %v990_v4 = vsel %vm907_vm6, %v989_v52, %v988_v37  ;;  %vm1309_vm10 = vcmp.eq.s32.totalorder %v1307_v9, 0  ;;  %v1414_v38 = vsel %vm1412_vm2, %v4265_v14, %v1413_v18  ;;  %vm1415_vm9 = vcmp.eq.s32.totalorder %v1410_v23, 2  ;;  %v4353_v32 = vpop.eup %2613 }
 0x262   : > { %vm897_vm8 = vcmp.eq.s32.totalorder %v4327_v54, 0  ;;  %vm900_vm11 = vcmp.eq.s32.totalorder %v4327_v54, 2  ;;  %v993_v36 = vsel %vm4307_vm5, %v4706_v11, %v990_v4  ;;  %v1417_v45 = vsel %vm1415_vm9, %v1416_v29, %v4273_v42  ;;  %v4756_v29 = vld [vmem:[#allocation43_spill] sm:$0xff] }
 0x263   : > { %vm4749_vm12 = vcmp.lt.s32.totalorder %v3099_v5, 0  ;;  %v1609_v34 = vsub.s32 4, %v4750_v7  ;;  %v2616_v14 = vpop.eup %2615  ;;  %2619 = vcosq.f32 %v993_v36  ;;  %v1212_v0 = vsel %vm1205_vm4, %v1208_v27, %v1211_v43 }
 0x264   : > { %v1507_v53 = vsel %vm4749_vm12, %v1506_v24, %v4748_v59  ;;  %v1311_v15 = vsel %vm1309_vm10, %v4222_v10, %v1310_v8  ;;  %vm1312_vm6 = vcmp.eq.s32.totalorder %v1307_v9, 2  ;;  %v2618_v61 = vpop.eup %2617  ;;  %2621 = vsinq.f32 %v993_v36 }
 0x265   : > { %v1314_v19 = vsel %vm1312_vm6, %v1313_v51, %v4231_v44  ;;  %vm1411_vm5 = vcmp.lt.s32.totalorder %v1410_v23, 2  ;;  %v1815_v42 = vsub.s32 4, %v3982_v46  ;;  %vm896_vm9 = vcmp.lt.s32.totalorder %v4327_v54, 2  ;;  %v4754_v23 = vld [vmem:[#allocation41_spill] sm:$0xff] }
 0x266   : > { %v998_v57 = vand.u32 3, %v994_v30  ;;  %vm4751_vm7 = vweird.f32 %v4733_v6  ;;  %v1418_v37 = vsel %vm1411_vm5, %v1414_v38, %v1417_v45  ;;  %v1509_v47 = vsel %vm3818_vm3, 0, %v1507_v53 }
 0x267   : > { %v4372_v3 = vsel %vm4751_vm7, nan, %v1109_v39  ;;  %vm4752_vm4 = vweird.f32 %v2937_v35  ;;  %vm1308_vm2 = vcmp.lt.s32.totalorder %v1307_v9, 2  ;;  %vm4753_vm10 = vcmp.lt.s32.totalorder %v4711_v63, 0 }
 0x268   : > { %v4378_v10 = vsel %vm4752_vm4, nan, %v1212_v0  ;;  %v1610_v44 = vsel %vm4753_vm10, %v1609_v34, %v4750_v7  ;;  %v1712_v12 = vsub.s32 4, %v4754_v23  ;;  %v898_v18 = vxor.u32 2147483648, %v2618_v61  ;;  %v4758_v7 = vld [vmem:[#allocation42_spill] sm:$0xff] }
 0x269   : > { %v901_v8 = vxor.u32 2147483648, %v2616_v14  ;;  %v1315_v6 = vsel %vm1308_vm2, %v1311_v15, %v1314_v19  ;;  %vm1409_vm12 = vweird.f32 %v4716_v40  ;;  %vm1306_vm6 = vweird.f32 %v3191_v56 }
 0x26a   : > { %v4386_v21 = vsel %vm1409_vm12, nan, %v1418_v37  ;;  %v4388_v39 = vand.u32 3, %v1509_v47  ;;  %vm4755_vm3 = vcmp.lt.s32.totalorder %v3768_v58, 0  ;;  %vm894_vm5 = vweird.f32 %v4699_v1  ;;  %v4759_v37 = vld [vmem:[#allocation40_spill] sm:$0xff] }
 0x26b   : > { %v1816_v35 = vsel %vm4755_vm3, %v1815_v42, %v3982_v46  ;;  %vm999_vm7 = vcmp.lt.s32.totalorder %v998_v57, 2  ;;  %vm1000_vm4 = vcmp.eq.s32.totalorder %v998_v57, 0  ;;  %vm1003_vm10 = vcmp.eq.s32.totalorder %v998_v57, 2 }
 0x26c   : > { %v1516_v9 = vxor.u32 2147483648, %v3925_v22  ;;  %v1612_v40 = vsel %vm4128_vm0, 0, %v1610_v44  ;;  %vm997_vm2 = vweird.f32 %v4706_v11  ;;  %v2041_v56 = vpack.c.bf16 %v4378_v10, %v4372_v3 }
 0x26d   : > { %v1316_v51 = vsel %vm1306_vm6, nan, %v1315_v6  ;;  %v1519_v59 = vxor.u32 2147483648, %v4756_v29  ;;  %vm4757_vm12 = vcmp.lt.s32.totalorder %v4725_v62, 0  ;;  %v899_v24 = vsel %vm897_vm8, %v2616_v14, %v898_v18  ;;  %v2620_v38 = vpop.eup %2619 }
 0x26e   : > { %v1713_v46 = vsel %vm4757_vm12, %v1712_v12, %v4754_v23  ;;  %v902_v52 = vsel %vm900_vm11, %v901_v8, %v2618_v61  ;;  %v2042_v48 = vpack.c.bf16 %v4386_v21, %v1316_v51  ;;  %v1818_v30 = vsel %vm4259_vm14, 0, %v1816_v35  ;;  %v2622_v14 = vpop.eup %2621 }
 0x26f   : > { %vm1515_vm0 = vcmp.eq.s32.totalorder %v4388_v39, 0  ;;  %v1616_v27 = vand.u32 3, %v1612_v40  ;;  %v1619_v43 = vxor.u32 2147483648, %v4246_v17  ;;  %v1622_v4 = vxor.u32 2147483648, %v4242_v49 }
 0x270   : > { %v1517_v36 = vsel %vm1515_vm0, %v4756_v29, %v1516_v9  ;;  %v1715_v45 = vsel %vm4217_vm15, 0, %v1713_v46  ;;  %v1722_v53 = vxor.u32 2147483648, %v4314_v60  ;;  %v2021_v34 = vsub.s32 4, %v4758_v7 }
 0x271   : > { %v903_v26 = vsel %vm896_vm9, %v899_v24, %v902_v52  ;;  %v1004_v0 = vxor.u32 2147483648, %v2620_v38  ;;  %v1725_v15 = vxor.u32 2147483648, %v4295_v2  ;;  %v1822_v61 = vand.u32 3, %v1818_v30 }
 0x272   : > { %v1001_v19 = vxor.u32 2147483648, %v2622_v14  ;;  %v1825_v42 = vxor.u32 2147483648, %v4353_v32  ;;  %v1828_v3 = vxor.u32 2147483648, %v4340_v28  ;;  %v1918_v33 = vsub.s32 4, %v4759_v37 }
 0x273   : > { %v1005_v47 = vsel %vm1003_vm10, %v1004_v0, %v2622_v14  ;;  %vm1618_vm14 = vcmp.eq.s32.totalorder %v1616_v27, 0  ;;  %vm1621_vm15 = vcmp.eq.s32.totalorder %v1616_v27, 2  ;;  %v1719_v10 = vand.u32 3, %v1715_v45 }
 0x274   : > { %v1002_v44 = vsel %vm1000_vm4, %v2620_v38, %v1001_v19  ;;  %v1620_v54 = vsel %vm1618_vm14, %v4242_v49, %v1619_v43  ;;  %v1623_v23 = vsel %vm1621_vm15, %v1622_v4, %v4246_v17  ;;  %vm4760_vm11 = vcmp.lt.s32.totalorder %v3676_v41, 0 }
 0x275   : > { %v2022_v12 = vsel %vm4760_vm11, %v2021_v34, %v4758_v7  ;;  %v904_v18 = vsel %vm894_vm5, nan, %v903_v26  ;;  %v1006_v8 = vsel %vm999_vm7, %v1002_v44, %v1005_v47  ;;  %vm1824_vm8 = vcmp.eq.s32.totalorder %v1822_v61, 0 }
 0x276   : > { %vm1827_vm9 = vcmp.eq.s32.totalorder %v1822_v61, 2  ;;  %v1007_v6 = vsel %vm997_vm2, nan, %v1006_v8  ;;  %v1826_v21 = vsel %vm1824_vm8, %v4340_v28, %v1825_v42  ;;  %vm4761_vm6 = vcmp.lt.s32.totalorder %v4721_v13, 0 }
 0x277   : > { %v1829_v49 = vsel %vm1827_vm9, %v1828_v3, %v4353_v32  ;;  %v1919_v17 = vsel %vm4761_vm6, %v1918_v33, %v4759_v37  ;;  %v2040_v35 = vpack.c.bf16 %v1007_v6, %v904_v18  ;;  %vm1721_vm3 = vcmp.eq.s32.totalorder %v1719_v10, 0 }
 0x278   : > { %vm1724_vm4 = vcmp.eq.s32.totalorder %v1719_v10, 2  ;;  %v2024_v1 = vsel %vm4238_vm1, 0, %v2022_v12  ;;  %vm1518_vm5 = vcmp.eq.s32.totalorder %v4388_v39, 2  ;;  %v1723_v57 = vsel %vm1721_vm3, %v4295_v2, %v1722_v53 }
 0x279   : > { %v1726_v11 = vsel %vm1724_vm4, %v1725_v15, %v4314_v60  ;;  %vm1823_vm7 = vcmp.lt.s32.totalorder %v1822_v61, 2  ;;  %2444 = vmatprep.mubr.bf16.mxu1 %v2040_v35  ;;  %v1520_v28 = vsel %vm1518_vm5, %v1519_v59, %v3925_v22  ;;  %vm1617_vm10 = vcmp.lt.s32.totalorder %v1616_v27, 2 }
 0x27a   : > { %v1830_v32 = vsel %vm1823_vm7, %v1826_v21, %v1829_v49  ;;  %v1921_v9 = vsel %vm4195_vm13, 0, %v1919_v17  ;;  %2445 = vmatmul.mubr.bf16.vlgmr.msra.gmra.mrb[0].mxu1 %v2041_v56  ;;  %vm1514_vm2 = vcmp.lt.s32.totalorder %v4388_v39, 2  ;;  %v1624_v25 = vsel %vm1617_vm10, %v1620_v54, %v1623_v23 }
 0x27b   : > { %vm1720_vm1 = vcmp.lt.s32.totalorder %v1719_v10, 2  ;;  %v2028_v40 = vand.u32 3, %v2024_v1  ;;  %2448 = vmatprep.mubr.bf16.mxu1 %v2042_v48  ;;  %vm1821_vm12 = vweird.f32 %v3768_v58  ;;  %v2031_v2 = vxor.u32 2147483648, %v4325_v55 }
 0x27c   : > { %v1727_v51 = vsel %vm1720_vm1, %v1723_v57, %v1726_v11  ;;  %v2034_v60 = vxor.u32 2147483648, %v4320_v16  ;;  %v1521_v22 = vsel %vm1514_vm2, %v1517_v36, %v1520_v28  ;;  %vm1615_vm0 = vweird.f32 %v4711_v63 }
 0x27d   : > { %v1831_v29 = vsel %vm1821_vm12, nan, %v1830_v32  ;;  %v1925_v50 = vand.u32 3, %v1921_v9  ;;  %v1625_v59 = vsel %vm1615_vm0, nan, %v1624_v25  ;;  %vm1718_vm13 = vweird.f32 %v4725_v62 }
 0x27e   : > { %v1928_v39 = vxor.u32 2147483648, %v4289_v31  ;;  %v1931_v56 = vxor.u32 2147483648, %v4279_v20  ;;  %vm1512_vm14 = vweird.f32 %v3099_v5  ;;  %v1728_v46 = vsel %vm1718_vm13, nan, %v1727_v51 }
 0x27f   : > { %vm2030_vm15 = vcmp.eq.s32.totalorder %v2028_v40, 0  ;;  %vm2033_vm11 = vcmp.eq.s32.totalorder %v2028_v40, 2  ;;  %v1522_v58 = vsel %vm1512_vm14, nan, %v1521_v22  ;;  %v2044_v24 = vpack.c.bf16 %v1831_v29, %v1728_v46 }
 0x280   : > { %v2032_v52 = vsel %vm2030_vm15, %v4320_v16, %v2031_v2  ;;  %v2035_v63 = vsel %vm2033_vm11, %v2034_v60, %v4325_v55  ;;  %v2043_v48 = vpack.c.bf16 %v1625_v59, %v1522_v58  ;;  %vm1927_vm8 = vcmp.eq.s32.totalorder %v1925_v50, 0 }
 0x281   : > { %vm1930_vm9 = vcmp.eq.s32.totalorder %v1925_v50, 2  ;;  %v1929_v62 = vsel %vm1927_vm8, %v4279_v20, %v1928_v39  ;;  %vm2029_vm6 = vcmp.lt.s32.totalorder %v2028_v40, 2  ;;  %vm1926_vm3 = vcmp.lt.s32.totalorder %v1925_v50, 2  ;;  %v2370_v20 = vld [vmem:[%s4514_s4] ss:$0 sm:$0xff] }
 0x282   : > { %v1932_v30 = vsel %vm1930_vm9, %v1931_v56, %v4289_v31  ;;  %2449 = vmatmul.mubr.bf16.gmra.mrb[4].mxu1 %v2043_v48  ;;  %v2036_v5 = vsel %vm2029_vm6, %v2032_v52, %v2035_v63  ;;  %vm2027_vm4 = vweird.f32 %v3676_v41  ;;  %vm1924_vm5 = vweird.f32 %v4721_v13 }
 0x283   : > { %2452 = vmatprep.mubr.bf16.mxu1 %v2044_v24  ;;  %v1933_v27 = vsel %vm1926_vm3, %v1929_v62, %v1932_v30  ;;  %v2037_v43 = vsel %vm2027_vm4, nan, %v2036_v5  ;;  %vm2214_vm7 = vcmask 31744  }
 0x284   : > { %v1934_v16 = vsel %vm1924_vm5, nan, %v1933_v27 }
 0x285   : > { %v2045_v55 = vpack.c.bf16 %v2037_v43, %v1934_v16 }
 0x28a   : > { %2453 = vmatmul.mubr.bf16.gmra.mrb[8].mxu1 %v2045_v55 }
 0x2f4   : > { %v2442_v41 = vpop.f32.mrb[16].mxu0 }
 0x2f5   : > { %v2160_v13 = vadd.f32 %v2442_v41, %v2370_v20  ;;  %v2151_v31 = vpop.f32.mrb[17].mxu0 }
 0x2f6   : > { %v2152_v4 = vadd.f32 %v2370_v20, %v2151_v31  ;;  %v2443_v38 = vpop.f32.mrb[18].mxu0 }
 0x2f7   : > { %2217 = vst.msk [vmem:[%s4473_s29 + $0x10] sm:$0xff] %vm2214_vm7, %v2160_v13  ;;  %v2163_v36 = vadd.f32 %v2443_v38, %v2370_v20  ;;  %v2154_v45 = vpop.f32.mrb[19].mxu0 }
 0x2f8   : > { %2215 = vst.msk [vmem:[%s4473_s29] sm:$0xff] %vm2214_vm7, %v2152_v4  ;;  %v2155_v53 = vadd.f32 %v2370_v20, %v2154_v45 }
 0x2f9   : > { %2218 = vst.msk [vmem:[%s4473_s29 + $0x18] sm:$0xff] %vm2214_vm7, %v2163_v36 }
 0x2fa   : > { %2216 = vst.msk [vmem:[%s4473_s29 + $0x8] sm:$0xff] %vm2214_vm7, %v2155_v53 }
 0x34d   : > { %v2446_v7 = vpop.f32.mrb[0].mxu1 }
 0x34e   : > { %v2176_v34 = vadd.f32 %v2446_v7, %v2370_v20  ;;  %v2167_v14 = vpop.f32.mrb[1].mxu1 }
 0x34f   : > { %v2168_v26 = vadd.f32 %v2370_v20, %v2167_v14  ;;  %v2447_v0 = vpop.f32.mrb[2].mxu1 }
 0x350   : > { %2221 = vst.msk [vmem:[%s4473_s29 + $0x30] sm:$0xff] %vm2214_vm7, %v2176_v34  ;;  %v2179_v15 = vadd.f32 %v2447_v0, %v2370_v20  ;;  %v2170_v61 = vpop.f32.mrb[3].mxu1 }
 0x351   : > { %2219 = vst.msk [vmem:[%s4473_s29 + $0x20] sm:$0xff] %vm2214_vm7, %v2168_v26  ;;  %v2171_v19 = vadd.f32 %v2370_v20, %v2170_v61 }
 0x352   : > { %2222 = vst.msk [vmem:[%s4473_s29 + $0x38] sm:$0xff] %vm2214_vm7, %v2179_v15 }
 0x353   : > { %2220 = vst.msk [vmem:[%s4473_s29 + $0x28] sm:$0xff] %vm2214_vm7, %v2171_v19 }
 0x355   : > { %v2450_v42 = vpop.f32.mrb[4].mxu1 }
 0x356   : > { %v2192_v3 = vadd.f32 %v2450_v42, %v2370_v20  ;;  %v2183_v37 = vpop.f32.mrb[5].mxu1 }
 0x357   : > { %v2184_v33 = vadd.f32 %v2370_v20, %v2183_v37  ;;  %v2451_v47 = vpop.f32.mrb[6].mxu1 }
 0x358   : > { %2225 = vst.msk [vmem:[%s4473_s29 + $0x50] sm:$0xff] %vm2214_vm7, %v2192_v3  ;;  %v2195_v10 = vadd.f32 %v2451_v47, %v2370_v20  ;;  %v2186_v44 = vpop.f32.mrb[7].mxu1 }
 0x359   : > { %2223 = vst.msk [vmem:[%s4473_s29 + $0x40] sm:$0xff] %vm2214_vm7, %v2184_v33  ;;  %v2187_v54 = vadd.f32 %v2370_v20, %v2186_v44 }
 0x35a   : > { %2226 = vst.msk [vmem:[%s4473_s29 + $0x58] sm:$0xff] %vm2214_vm7, %v2195_v10 }
 0x35b   : > { %2224 = vst.msk [vmem:[%s4473_s29 + $0x48] sm:$0xff] %vm2214_vm7, %v2187_v54 }
 0x35d   : > { %v2454_v23 = vpop.f32.mrb[8].mxu1 }
 0x35e   : > { %v2208_v12 = vadd.f32 %v2454_v23, %v2370_v20  ;;  %v2199_v18 = vpop.f32.mrb[9].mxu1 }
 0x35f   : > { %v2200_v8 = vadd.f32 %v2370_v20, %v2199_v18  ;;  %v2455_v6 = vpop.f32.mrb[10].mxu1 }
 0x360   : > { %2229 = vst.msk [vmem:[%s4473_s29 + $0x70] sm:$0xff] %vm2214_vm7, %v2208_v12  ;;  %v2211_v21 = vadd.f32 %v2455_v6, %v2370_v20  ;;  %v2202_v49 = vpop.f32.mrb[11].mxu1 }
 0x361   : > { %2227 = vst.msk [vmem:[%s4473_s29 + $0x60] sm:$0xff] %vm2214_vm7, %v2200_v8  ;;  %v2203_v17 = vadd.f32 %v2370_v20, %v2202_v49 }
 0x362   : > { %2230 = vst.msk [vmem:[%s4473_s29 + $0x78] sm:$0xff] %vm2214_vm7, %v2211_v21 }
 0x363   : > { %2228 = vst.msk [vmem:[%s4473_s29 + $0x68] sm:$0xff] %vm2214_vm7, %v2203_v17 }
 0x364 PF: > { %s15_s18 = sadd.s32 1, %s2630_s18  }
 0x365   : > { %p12_p4 = scmp.ge.s32.totalorder %s15_s18, 4  }
 0x367   :  { %14 = sbr.rel (!%p12_p4) target bundleno = 1 (0x1), region = 70 }

</bundles_post_ra>
